<compile_context>
chip_gen: v7x
topology: tpu7x:2x2x1
jax: 0.10.0
libtpu: 0.0.40
codegen_flags: <defaults>
</compile_context>

<pallas_src>
import functools
import math

import jax
import jax.numpy as jnp
import numpy as np
from jax.experimental import pallas as pl
from jax.experimental.pallas import tpu as pltpu

# ---------------- config (small synthetic BERT) ----------------
VOCAB = 50
HIDDEN = 32
NUM_HEADS = 2
HEAD_SIZE = HIDDEN // NUM_HEADS
INTERMEDIATE = 64
NUM_LAYERS = 2
MAX_POS = 16
TYPE_VOCAB = 2
LN_EPS = 1e-12


# ---------------- shared math helpers (kernel + reference) ----------------
def _layer_norm(x, gamma, beta, eps):
    mu = jnp.mean(x, axis=-1, keepdims=True)
    var = jnp.mean((x - mu) ** 2, axis=-1, keepdims=True)
    return (x - mu) * jax.lax.rsqrt(var + eps) * gamma + beta


def _gelu(x):
    # TODO(synk): PyTorch F.gelu defaults to the exact erf formulation; using
    # the tanh approximation since erf lowering on Mosaic is not guaranteed.
    c = math.sqrt(2.0 / math.pi)
    return 0.5 * x * (1.0 + jnp.tanh(c * (x + 0.044715 * x * x * x)))


# ---------------- fused Pallas kernel (one grid step = one batch element) ---
def bert_fused_kernel(emb_ref, bias_ref, emb_g_ref, emb_b_ref,
                      wqkv_ref, bqkv_ref, wd_ref, bd_ref, g1_ref, b1_ref,
                      wi_ref, bi_ref, wo_ref, bo_ref, g2_ref, b2_ref,
                      pw_ref, pb_ref,
                      hid_ref, pool_ref, *, eps, num_heads):
    _, S, H = emb_ref.shape
    L = wqkv_ref.shape[0]
    hd = H // num_heads
    inv_sqrt_hd = 1.0 / math.sqrt(hd)

    # --- embedding LayerNorm (embed_dropout is identity in eval mode) ---
    x = _layer_norm(emb_ref[0], emb_g_ref[...], emb_b_ref[...], eps)      # (S,H)
    key_bias = bias_ref[0]                                                # (1,S)

    # --- encoder: layer loop fully inside the kernel (weights VMEM-resident)
    # TODO(synk): switch to lax.fori_loop / a layer grid axis once L > 2.
    for l in range(L):
        # fused Q/K/V projection: ONE (S,H)x(H,3H) matmul per layer
        qkv = jnp.dot(x, wqkv_ref[l],
                      preferred_element_type=jnp.float32) + bqkv_ref[l]   # (S,3H)
        q_all = qkv[:, :H] * inv_sqrt_hd        # scale folded into q once

        # per-head attention (scores are inherently per-head matmuls)
        ctx_heads = []
        for h in range(num_heads):
            qh = q_all[:, h * hd:(h + 1) * hd]                            # (S,hd)
            kh = qkv[:, H + h * hd: H + (h + 1) * hd]                     # (S,hd)
            vh = qkv[:, 2 * H + h * hd: 2 * H + (h + 1) * hd]             # (S,hd)
            s = jnp.einsum('qd,kd->qk', qh, kh,
                           preferred_element_type=jnp.float32) + key_bias  # (S,S)
            s = s - jnp.max(s, axis=-1, keepdims=True)
            p = jnp.exp(s)
            p = p * pl.reciprocal(jnp.sum(p, axis=-1, keepdims=True),
                                  approx=True)
            ctx_heads.append(jnp.dot(p, vh,
                                     preferred_element_type=jnp.float32))  # (S,hd)
        ctx = jnp.concatenate(ctx_heads, axis=-1)                          # (S,H)

        # attention output dense: single matmul contracting heads*head_dim = H
        attn = jnp.dot(ctx, wd_ref[l],
                       preferred_element_type=jnp.float32) + bd_ref[l]     # (S,H)

        # add & norm (attention_dropout is identity in eval mode)
        h1 = _layer_norm(attn + x, g1_ref[l], b1_ref[l], eps)

        # feed-forward + add & norm (out_dropout identity in eval mode)
        ff = _gelu(jnp.dot(h1, wi_ref[l],
                           preferred_element_type=jnp.float32) + bi_ref[l])
        ff = jnp.dot(ff, wo_ref[l],
                     preferred_element_type=jnp.float32) + bo_ref[l]
        x = _layer_norm(ff + h1, g2_ref[l], b2_ref[l], eps)
        # TODO(synk): the trailing LoRA residual in BertLayer.forward references
        # undefined attributes (self.x / lora_A with r=0 default) and is skipped.

    hid_ref[0] = x

    # --- fused pooler: direct first-token row read (no selector matmul) ---
    first_tk = x[0:1, :]                                                   # (1,H)
    pool_ref[0] = jnp.tanh(
        jnp.dot(first_tk, pw_ref[...], preferred_element_type=jnp.float32)
        + pb_ref[...])


def bert_fused_forward(packed, embeds, key_bias, B, S):
    H = HIDDEN
    args = (embeds, key_bias, packed["emb_g"], packed["emb_b"],
            packed["wqkv"], packed["bqkv"], packed["wd"], packed["bd"],
            packed["g1"], packed["b1"], packed["wi"], packed["bi"],
            packed["wo"], packed["bo"], packed["g2"], packed["b2"],
            packed["pool_w"], packed["pool_b"])

    def resident(shape):        # weights: same block for every grid step
        nd = len(shape)
        return pl.BlockSpec(shape, lambda b, _nd=nd: (0,) * _nd)

    in_specs = [
        pl.BlockSpec((1, S, H), lambda b: (b, 0, 0)),   # embeddings, per batch
        pl.BlockSpec((1, 1, S), lambda b: (b, 0, 0)),   # additive key bias
    ] + [resident(a.shape) for a in args[2:]]

    hidden, pooled = pl.pallas_call(
        functools.partial(bert_fused_kernel, eps=LN_EPS, num_heads=NUM_HEADS),
        out_shape=(jax.ShapeDtypeStruct((B, S, H), jnp.float32),
                   jax.ShapeDtypeStruct((B, 1, H), jnp.float32)),
        grid=(B,),
        in_specs=in_specs,
        out_specs=(pl.BlockSpec((1, S, H), lambda b: (b, 0, 0)),
                   pl.BlockSpec((1, 1, H), lambda b: (b, 0, 0))),
        compiler_params=pltpu.CompilerParams(
            dimension_semantics=("parallel",)),
    )(*args)
    return hidden, pooled[:, 0, :]


# ---------------- wrapper-side layout plumbing ----------------
def pack_params(params):
    layers = params["layers"]
    stack = lambda fn: jnp.stack([fn(lp) for lp in layers])
    return {
        "emb_g": params["emb_g"], "emb_b": params["emb_b"],
        # fused QKV: (L, H, 3H) weights and (L, 1, 3H) biases
        "wqkv": stack(lambda lp: jnp.concatenate(
            [lp["wq"], lp["wk"], lp["wv"]], axis=1)),
        "bqkv": stack(lambda lp: jnp.concatenate(
            [lp["bq"], lp["bk"], lp["bv"]], axis=1)),
        "wd": stack(lambda lp: lp["wd"]), "bd": stack(lambda lp: lp["bd"]),
        "g1": stack(lambda lp: lp["g1"]), "b1": stack(lambda lp: lp["b1"]),
        "wi": stack(lambda lp: lp["wi"]), "bi": stack(lambda lp: lp["bi"]),
        "wo": stack(lambda lp: lp["wo"]), "bo": stack(lambda lp: lp["bo"]),
        "g2": stack(lambda lp: lp["g2"]), "b2": stack(lambda lp: lp["b2"]),
        "pool_w": params["pool_w"], "pool_b": params["pool_b"],
    }


def bert_model_forward(params, input_ids, attention_mask):
    B, S = input_ids.shape
    # embed(): gathers stay in plain JAX glue
    word = jnp.take(params["word_emb"], input_ids, axis=0)        # (B,S,H)
    pos = params["pos_emb"][:S][None, :, :]                       # (1,S,H)
    tok = params["type_emb"][0][None, None, :]                    # token type ids = 0
    embeds = (word + pos + tok).astype(jnp.float32)               # (B,S,H)

    # extended attention mask: (1 - mask) * -10000 additive key bias, per batch
    key_bias = ((1.0 - attention_mask.astype(jnp.float32))
                * -10000.0).reshape(B, 1, S)

    packed = pack_params(params)
    hidden, pooled = bert_fused_forward(packed, embeds, key_bias, B, S)
    return {"last_hidden_state": hidden, "pooler_output": pooled}


# ---------------- pure-JAX reference (for correctness check) ----------------
def reference_forward(params, input_ids, attention_mask):
    B, S = input_ids.shape
    word = jnp.take(params["word_emb"], input_ids, axis=0)
    pos = params["pos_emb"][:S][None, :, :]
    tok = params["type_emb"][0][None, None, :]
    hidden = _layer_norm(word + pos + tok, params["emb_g"], params["emb_b"], LN_EPS)
    ext = ((1.0 - attention_mask.astype(jnp.float32)) * -10000.0).reshape(B, 1, S)
    scale = 1.0 / math.sqrt(HEAD_SIZE)
    for p in params["layers"]:
        q = hidden @ p["wq"] + p["bq"]
        k = hidden @ p["wk"] + p["bk"]
        v = hidden @ p["wv"] + p["bv"]

        def split(t):
            return t.reshape(B, S, NUM_HEADS, HEAD_SIZE).transpose(0, 2, 1, 3)

        qh, kh, vh = split(q), split(k), split(v)
        s = jnp.einsum("bhqd,bhkd->bhqk", qh, kh) * scale + ext[:, None, :, :]
        pa = jax.nn.softmax(s, axis=-1)
        ctx = jnp.einsum("bhqk,bhkd->bhqd", pa, vh)
        ctx = ctx.transpose(0, 2, 1, 3).reshape(B, S, HIDDEN)
        attn = ctx @ p["wd"] + p["bd"]
        h1 = _layer_norm(attn + hidden, p["g1"], p["b1"], LN_EPS)
        ff = _gelu(h1 @ p["wi"] + p["bi"])
        ff = ff @ p["wo"] + p["bo"]
        hidden = _layer_norm(ff + h1, p["g2"], p["b2"], LN_EPS)
    pooled = jnp.tanh(hidden[:, 0, :] @ params["pool_w"] + params["pool_b"])
    return {"last_hidden_state": hidden, "pooler_output": pooled}


# ---------------- deterministic parameter initialization ----------------
def init_params(key):
    keys = iter(jax.random.split(key, 8 + NUM_LAYERS * 8))
    nk = lambda: next(keys)
    rnd = lambda shape: (jax.random.normal(nk(), shape, jnp.float32) * 0.02)
    ones = lambda shape: jnp.ones(shape, jnp.float32)
    zeros = lambda shape: jnp.zeros(shape, jnp.float32)

    params = {
        "word_emb": rnd((VOCAB, HIDDEN)),
        "pos_emb": rnd((MAX_POS, HIDDEN)),
        "type_emb": rnd((TYPE_VOCAB, HIDDEN)),
        "emb_g": ones((1, HIDDEN)),
        "emb_b": zeros((1, HIDDEN)),
        "pool_w": rnd((HIDDEN, HIDDEN)),
        "pool_b": zeros((1, HIDDEN)),
        "layers": [],
    }
    for _ in range(NUM_LAYERS):
        params["layers"].append({
            "wq": rnd((HIDDEN, HIDDEN)), "bq": zeros((1, HIDDEN)),
            "wk": rnd((HIDDEN, HIDDEN)), "bk": zeros((1, HIDDEN)),
            "wv": rnd((HIDDEN, HIDDEN)), "bv": zeros((1, HIDDEN)),
            "wd": rnd((HIDDEN, HIDDEN)), "bd": zeros((1, HIDDEN)),
            "g1": ones((1, HIDDEN)), "b1": zeros((1, HIDDEN)),
            "wi": rnd((HIDDEN, INTERMEDIATE)), "bi": zeros((1, INTERMEDIATE)),
            "wo": rnd((INTERMEDIATE, HIDDEN)), "bo": zeros((1, HIDDEN)),
            "g2": ones((1, HIDDEN)), "b2": zeros((1, HIDDEN)),
        })
    return params


if __name__ == "__main__":
    key = jax.random.PRNGKey(0)
    pkey, ikey = jax.random.split(key)
    params = init_params(pkey)

    B, S = 2, 8
    input_ids = jax.random.randint(ikey, (B, S), 1, VOCAB, dtype=jnp.int32)
    attention_mask = jnp.ones((B, S), dtype=jnp.int32).at[:, S - 2:].set(0)

    out = bert_model_forward(params, input_ids, attention_mask)
    jax.block_until_ready(out)

    ref = reference_forward(params, input_ids, attention_mask)
    # Tolerance 2e-3: the kernel's softmax uses the EUP approximate reciprocal
    # (pl.reciprocal(approx=True)); everything else is exact f32.
    assert np.allclose(np.asarray(out["last_hidden_state"]),
                       np.asarray(ref["last_hidden_state"]), atol=2e-3)
    assert np.allclose(np.asarray(out["pooler_output"]),
                       np.asarray(ref["pooler_output"]), atol=2e-3)
    print("KERNEL_OK")
</pallas_src>

<mosaic_0001>
module attributes {stable_mosaic.version = 11 : i64} {
  func.func @bert_fused_kernel(%arg0: i32, %arg1: memref<1x8x32xf32, #tpu.memory_space<vmem>>, %arg2: memref<1x1x8xf32, #tpu.memory_space<vmem>>, %arg3: memref<1x32xf32, #tpu.memory_space<vmem>>, %arg4: memref<1x32xf32, #tpu.memory_space<vmem>>, %arg5: memref<2x32x96xf32, #tpu.memory_space<vmem>>, %arg6: memref<2x1x96xf32, #tpu.memory_space<vmem>>, %arg7: memref<2x32x32xf32, #tpu.memory_space<vmem>>, %arg8: memref<2x1x32xf32, #tpu.memory_space<vmem>>, %arg9: memref<2x1x32xf32, #tpu.memory_space<vmem>>, %arg10: memref<2x1x32xf32, #tpu.memory_space<vmem>>, %arg11: memref<2x32x64xf32, #tpu.memory_space<vmem>>, %arg12: memref<2x1x64xf32, #tpu.memory_space<vmem>>, %arg13: memref<2x64x32xf32, #tpu.memory_space<vmem>>, %arg14: memref<2x1x32xf32, #tpu.memory_space<vmem>>, %arg15: memref<2x1x32xf32, #tpu.memory_space<vmem>>, %arg16: memref<2x1x32xf32, #tpu.memory_space<vmem>>, %arg17: memref<32x32xf32, #tpu.memory_space<vmem>>, %arg18: memref<1x32xf32, #tpu.memory_space<vmem>>, %arg19: memref<1x8x32xf32, #tpu.memory_space<vmem>>, %arg20: memref<1x1x32xf32, #tpu.memory_space<vmem>>) attributes {dimension_semantics = [#tpu.dimension_semantics<parallel>], iteration_bounds = array<i64: 2>, scalar_prefetch = 0 : i64, scratch_operands = 0 : i64, tpu.core_type = #tpu.core_type<tc>, window_params = [{transform_indices = @transform_0, window_bounds = array<i64: 1, 8, 32>}, {transform_indices = @transform_1, window_bounds = array<i64: 1, 1, 8>}, {pipeline_mode = #tpu.pipeline_mode<synchronous>, transform_indices = @transform_2, window_bounds = array<i64: 1, 32>}, {pipeline_mode = #tpu.pipeline_mode<synchronous>, transform_indices = @transform_3, window_bounds = array<i64: 1, 32>}, {pipeline_mode = #tpu.pipeline_mode<synchronous>, transform_indices = @transform_4, window_bounds = array<i64: 2, 32, 96>}, {pipeline_mode = #tpu.pipeline_mode<synchronous>, transform_indices = @transform_5, window_bounds = array<i64: 2, 1, 96>}, {pipeline_mode = #tpu.pipeline_mode<synchronous>, transform_indices = @transform_6, window_bounds = array<i64: 2, 32, 32>}, {pipeline_mode = #tpu.pipeline_mode<synchronous>, transform_indices = @transform_7, window_bounds = array<i64: 2, 1, 32>}, {pipeline_mode = #tpu.pipeline_mode<synchronous>, transform_indices = @transform_8, window_bounds = array<i64: 2, 1, 32>}, {pipeline_mode = #tpu.pipeline_mode<synchronous>, transform_indices = @transform_9, window_bounds = array<i64: 2, 1, 32>}, {pipeline_mode = #tpu.pipeline_mode<synchronous>, transform_indices = @transform_10, window_bounds = array<i64: 2, 32, 64>}, {pipeline_mode = #tpu.pipeline_mode<synchronous>, transform_indices = @transform_11, window_bounds = array<i64: 2, 1, 64>}, {pipeline_mode = #tpu.pipeline_mode<synchronous>, transform_indices = @transform_12, window_bounds = array<i64: 2, 64, 32>}, {pipeline_mode = #tpu.pipeline_mode<synchronous>, transform_indices = @transform_13, window_bounds = array<i64: 2, 1, 32>}, {pipeline_mode = #tpu.pipeline_mode<synchronous>, transform_indices = @transform_14, window_bounds = array<i64: 2, 1, 32>}, {pipeline_mode = #tpu.pipeline_mode<synchronous>, transform_indices = @transform_15, window_bounds = array<i64: 2, 1, 32>}, {pipeline_mode = #tpu.pipeline_mode<synchronous>, transform_indices = @transform_16, window_bounds = array<i64: 32, 32>}, {pipeline_mode = #tpu.pipeline_mode<synchronous>, transform_indices = @transform_17, window_bounds = array<i64: 1, 32>}, {transform_indices = @transform_18, window_bounds = array<i64: 1, 8, 32>}, {transform_indices = @transform_19, window_bounds = array<i64: 1, 1, 32>}]} {
    %c0 = arith.constant 0 : index
    %c0_0 = arith.constant 0 : index
    %c0_1 = arith.constant 0 : index
    %0 = vector.load %arg1[%c0, %c0_0, %c0_1] : memref<1x8x32xf32, #tpu.memory_space<vmem>>, vector<1x8x32xf32>
    %1 = vector.shape_cast %0 : vector<1x8x32xf32> to vector<8x32xf32>
    %c0_2 = arith.constant 0 : index
    %c0_3 = arith.constant 0 : index
    %2 = vector.load %arg3[%c0_2, %c0_3] : memref<1x32xf32, #tpu.memory_space<vmem>>, vector<1x32xf32>
    %c0_4 = arith.constant 0 : index
    %c0_5 = arith.constant 0 : index
    %3 = vector.load %arg4[%c0_4, %c0_5] : memref<1x32xf32, #tpu.memory_space<vmem>>, vector<1x32xf32>
    %cst = arith.constant dense<0.000000e+00> : vector<8xf32>
    %4 = vector.multi_reduction <add>, %1, %cst [1] : vector<8x32xf32> to vector<8xf32>
    %5 = vector.shape_cast %4 : vector<8xf32> to vector<8x1xf32>
    %cst_6 = arith.constant 3.200000e+01 : f32
    %6 = vector.broadcast %cst_6 : f32 to vector<8x1xf32>
    %7 = arith.divf %5, %6 : vector<8x1xf32>
    %8 = vector.broadcast %7 : vector<8x1xf32> to vector<8x32xf32>
    %9 = arith.subf %1, %8 : vector<8x32xf32>
    %10 = arith.mulf %9, %9 : vector<8x32xf32>
    %cst_7 = arith.constant dense<0.000000e+00> : vector<8xf32>
    %11 = vector.multi_reduction <add>, %10, %cst_7 [1] : vector<8x32xf32> to vector<8xf32>
    %12 = vector.shape_cast %11 : vector<8xf32> to vector<8x1xf32>
    %cst_8 = arith.constant 3.200000e+01 : f32
    %13 = vector.broadcast %cst_8 : f32 to vector<8x1xf32>
    %14 = arith.divf %12, %13 : vector<8x1xf32>
    %15 = vector.broadcast %7 : vector<8x1xf32> to vector<8x32xf32>
    %16 = arith.subf %1, %15 : vector<8x32xf32>
    %cst_9 = arith.constant 9.99999996E-13 : f32
    %17 = vector.broadcast %cst_9 : f32 to vector<8x1xf32>
    %18 = arith.addf %14, %17 : vector<8x1xf32>
    %19 = math.rsqrt %18 : vector<8x1xf32>
    %20 = vector.broadcast %19 : vector<8x1xf32> to vector<8x32xf32>
    %21 = arith.mulf %16, %20 : vector<8x32xf32>
    %22 = vector.broadcast %2 : vector<1x32xf32> to vector<8x32xf32>
    %23 = arith.mulf %21, %22 : vector<8x32xf32>
    %24 = vector.broadcast %3 : vector<1x32xf32> to vector<8x32xf32>
    %25 = arith.addf %23, %24 : vector<8x32xf32>
    %c0_10 = arith.constant 0 : index
    %c0_11 = arith.constant 0 : index
    %c0_12 = arith.constant 0 : index
    %26 = vector.load %arg2[%c0_10, %c0_11, %c0_12] : memref<1x1x8xf32, #tpu.memory_space<vmem>>, vector<1x1x8xf32>
    %27 = vector.shape_cast %26 : vector<1x1x8xf32> to vector<1x8xf32>
    %c0_13 = arith.constant 0 : index
    %c0_14 = arith.constant 0 : index
    %c0_15 = arith.constant 0 : index
    %28 = vector.load %arg5[%c0_13, %c0_14, %c0_15] : memref<2x32x96xf32, #tpu.memory_space<vmem>>, vector<1x32x96xf32>
    %29 = vector.shape_cast %28 : vector<1x32x96xf32> to vector<32x96xf32>
    %cst_16 = arith.constant dense<0.000000e+00> : vector<8x96xf32>
    %30 = tpu.matmul %25, %29, %cst_16 {dimension_numbers = #tpu.dot_dimension_numbers<[1], [0], [0], [1], [0, 0, 1, 1], [], []>} : vector<8x32xf32>, vector<32x96xf32>, vector<8x96xf32> -> vector<8x96xf32>
    %c0_17 = arith.constant 0 : index
    %c0_18 = arith.constant 0 : index
    %c0_19 = arith.constant 0 : index
    %31 = vector.load %arg6[%c0_17, %c0_18, %c0_19] : memref<2x1x96xf32, #tpu.memory_space<vmem>>, vector<1x1x96xf32>
    %32 = vector.shape_cast %31 : vector<1x1x96xf32> to vector<1x96xf32>
    %33 = vector.broadcast %32 : vector<1x96xf32> to vector<8x96xf32>
    %34 = arith.addf %30, %33 : vector<8x96xf32>
    %35 = vector.extract_strided_slice %34 {offsets = [0, 0], sizes = [8, 32], strides = [1, 1]} : vector<8x96xf32> to vector<8x32xf32>
    %cst_20 = arith.constant 2.500000e-01 : f32
    %36 = vector.broadcast %cst_20 : f32 to vector<8x32xf32>
    %37 = arith.mulf %35, %36 : vector<8x32xf32>
    %38 = vector.extract_strided_slice %37 {offsets = [0, 0], sizes = [8, 16], strides = [1, 1]} : vector<8x32xf32> to vector<8x16xf32>
    %39 = vector.extract_strided_slice %34 {offsets = [0, 32], sizes = [8, 16], strides = [1, 1]} : vector<8x96xf32> to vector<8x16xf32>
    %40 = vector.extract_strided_slice %34 {offsets = [0, 64], sizes = [8, 16], strides = [1, 1]} : vector<8x96xf32> to vector<8x16xf32>
    "tpu.trace_start"() <{level = 10 : i32, message = "qd,kd->qk"}> : () -> ()
    %cst_21 = arith.constant dense<0.000000e+00> : vector<8x8xf32>
    %41 = tpu.matmul %38, %39, %cst_21 {dimension_numbers = #tpu.dot_dimension_numbers<[1], [1], [0], [0], [0, 0, 1, 0], [], []>} : vector<8x16xf32>, vector<8x16xf32>, vector<8x8xf32> -> vector<8x8xf32>
    "tpu.trace_stop"() : () -> ()
    %42 = vector.broadcast %27 : vector<1x8xf32> to vector<8x8xf32>
    %43 = arith.addf %41, %42 : vector<8x8xf32>
    %cst_22 = arith.constant dense<0xFF800000> : vector<8xf32>
    %44 = vector.multi_reduction <maximumf>, %43, %cst_22 [1] : vector<8x8xf32> to vector<8xf32>
    %45 = vector.shape_cast %44 : vector<8xf32> to vector<8x1xf32>
    %46 = vector.broadcast %45 : vector<8x1xf32> to vector<8x8xf32>
    %47 = arith.subf %43, %46 : vector<8x8xf32>
    %48 = math.exp %47 : vector<8x8xf32>
    %cst_23 = arith.constant dense<0.000000e+00> : vector<8xf32>
    %49 = vector.multi_reduction <add>, %48, %cst_23 [1] : vector<8x8xf32> to vector<8xf32>
    %50 = vector.shape_cast %49 : vector<8xf32> to vector<8x1xf32>
    %51 = tpu.reciprocal %50 {approx = true} : vector<8x1xf32> -> vector<8x1xf32>
    %52 = vector.broadcast %51 : vector<8x1xf32> to vector<8x8xf32>
    %53 = arith.mulf %48, %52 : vector<8x8xf32>
    %cst_24 = arith.constant dense<0.000000e+00> : vector<8x16xf32>
    %54 = tpu.matmul %53, %40, %cst_24 {dimension_numbers = #tpu.dot_dimension_numbers<[1], [0], [0], [1], [0, 0, 1, 1], [], []>} : vector<8x8xf32>, vector<8x16xf32>, vector<8x16xf32> -> vector<8x16xf32>
    %55 = vector.extract_strided_slice %37 {offsets = [0, 16], sizes = [8, 16], strides = [1, 1]} : vector<8x32xf32> to vector<8x16xf32>
    %56 = vector.extract_strided_slice %34 {offsets = [0, 48], sizes = [8, 16], strides = [1, 1]} : vector<8x96xf32> to vector<8x16xf32>
    %57 = vector.extract_strided_slice %34 {offsets = [0, 80], sizes = [8, 16], strides = [1, 1]} : vector<8x96xf32> to vector<8x16xf32>
    "tpu.trace_start"() <{level = 10 : i32, message = "qd,kd->qk"}> : () -> ()
    %cst_25 = arith.constant dense<0.000000e+00> : vector<8x8xf32>
    %58 = tpu.matmul %55, %56, %cst_25 {dimension_numbers = #tpu.dot_dimension_numbers<[1], [1], [0], [0], [0, 0, 1, 0], [], []>} : vector<8x16xf32>, vector<8x16xf32>, vector<8x8xf32> -> vector<8x8xf32>
    "tpu.trace_stop"() : () -> ()
    %59 = vector.broadcast %27 : vector<1x8xf32> to vector<8x8xf32>
    %60 = arith.addf %58, %59 : vector<8x8xf32>
    %cst_26 = arith.constant dense<0xFF800000> : vector<8xf32>
    %61 = vector.multi_reduction <maximumf>, %60, %cst_26 [1] : vector<8x8xf32> to vector<8xf32>
    %62 = vector.shape_cast %61 : vector<8xf32> to vector<8x1xf32>
    %63 = vector.broadcast %62 : vector<8x1xf32> to vector<8x8xf32>
    %64 = arith.subf %60, %63 : vector<8x8xf32>
    %65 = math.exp %64 : vector<8x8xf32>
    %cst_27 = arith.constant dense<0.000000e+00> : vector<8xf32>
    %66 = vector.multi_reduction <add>, %65, %cst_27 [1] : vector<8x8xf32> to vector<8xf32>
    %67 = vector.shape_cast %66 : vector<8xf32> to vector<8x1xf32>
    %68 = tpu.reciprocal %67 {approx = true} : vector<8x1xf32> -> vector<8x1xf32>
    %69 = vector.broadcast %68 : vector<8x1xf32> to vector<8x8xf32>
    %70 = arith.mulf %65, %69 : vector<8x8xf32>
    %cst_28 = arith.constant dense<0.000000e+00> : vector<8x16xf32>
    %71 = tpu.matmul %70, %57, %cst_28 {dimension_numbers = #tpu.dot_dimension_numbers<[1], [0], [0], [1], [0, 0, 1, 1], [], []>} : vector<8x8xf32>, vector<8x16xf32>, vector<8x16xf32> -> vector<8x16xf32>
    %72 = tpu.concatenate %54, %71 in 1 : vector<8x16xf32>, vector<8x16xf32> -> vector<8x32xf32>
    %c0_29 = arith.constant 0 : index
    %c0_30 = arith.constant 0 : index
    %c0_31 = arith.constant 0 : index
    %73 = vector.load %arg7[%c0_29, %c0_30, %c0_31] : memref<2x32x32xf32, #tpu.memory_space<vmem>>, vector<1x32x32xf32>
    %74 = vector.shape_cast %73 : vector<1x32x32xf32> to vector<32x32xf32>
    %cst_32 = arith.constant dense<0.000000e+00> : vector<8x32xf32>
    %75 = tpu.matmul %72, %74, %cst_32 {dimension_numbers = #tpu.dot_dimension_numbers<[1], [0], [0], [1], [0, 0, 1, 1], [], []>} : vector<8x32xf32>, vector<32x32xf32>, vector<8x32xf32> -> vector<8x32xf32>
    %c0_33 = arith.constant 0 : index
    %c0_34 = arith.constant 0 : index
    %c0_35 = arith.constant 0 : index
    %76 = vector.load %arg8[%c0_33, %c0_34, %c0_35] : memref<2x1x32xf32, #tpu.memory_space<vmem>>, vector<1x1x32xf32>
    %77 = vector.shape_cast %76 : vector<1x1x32xf32> to vector<1x32xf32>
    %78 = vector.broadcast %77 : vector<1x32xf32> to vector<8x32xf32>
    %79 = arith.addf %75, %78 : vector<8x32xf32>
    %80 = arith.addf %79, %25 : vector<8x32xf32>
    %c0_36 = arith.constant 0 : index
    %c0_37 = arith.constant 0 : index
    %c0_38 = arith.constant 0 : index
    %81 = vector.load %arg9[%c0_36, %c0_37, %c0_38] : memref<2x1x32xf32, #tpu.memory_space<vmem>>, vector<1x1x32xf32>
    %82 = vector.shape_cast %81 : vector<1x1x32xf32> to vector<1x32xf32>
    %c0_39 = arith.constant 0 : index
    %c0_40 = arith.constant 0 : index
    %c0_41 = arith.constant 0 : index
    %83 = vector.load %arg10[%c0_39, %c0_40, %c0_41] : memref<2x1x32xf32, #tpu.memory_space<vmem>>, vector<1x1x32xf32>
    %84 = vector.shape_cast %83 : vector<1x1x32xf32> to vector<1x32xf32>
    %cst_42 = arith.constant dense<0.000000e+00> : vector<8xf32>
    %85 = vector.multi_reduction <add>, %80, %cst_42 [1] : vector<8x32xf32> to vector<8xf32>
    %86 = vector.shape_cast %85 : vector<8xf32> to vector<8x1xf32>
    %cst_43 = arith.constant 3.200000e+01 : f32
    %87 = vector.broadcast %cst_43 : f32 to vector<8x1xf32>
    %88 = arith.divf %86, %87 : vector<8x1xf32>
    %89 = vector.broadcast %88 : vector<8x1xf32> to vector<8x32xf32>
    %90 = arith.subf %80, %89 : vector<8x32xf32>
    %91 = arith.mulf %90, %90 : vector<8x32xf32>
    %cst_44 = arith.constant dense<0.000000e+00> : vector<8xf32>
    %92 = vector.multi_reduction <add>, %91, %cst_44 [1] : vector<8x32xf32> to vector<8xf32>
    %93 = vector.shape_cast %92 : vector<8xf32> to vector<8x1xf32>
    %cst_45 = arith.constant 3.200000e+01 : f32
    %94 = vector.broadcast %cst_45 : f32 to vector<8x1xf32>
    %95 = arith.divf %93, %94 : vector<8x1xf32>
    %96 = vector.broadcast %88 : vector<8x1xf32> to vector<8x32xf32>
    %97 = arith.subf %80, %96 : vector<8x32xf32>
    %cst_46 = arith.constant 9.99999996E-13 : f32
    %98 = vector.broadcast %cst_46 : f32 to vector<8x1xf32>
    %99 = arith.addf %95, %98 : vector<8x1xf32>
    %100 = math.rsqrt %99 : vector<8x1xf32>
    %101 = vector.broadcast %100 : vector<8x1xf32> to vector<8x32xf32>
    %102 = arith.mulf %97, %101 : vector<8x32xf32>
    %103 = vector.broadcast %82 : vector<1x32xf32> to vector<8x32xf32>
    %104 = arith.mulf %102, %103 : vector<8x32xf32>
    %105 = vector.broadcast %84 : vector<1x32xf32> to vector<8x32xf32>
    %106 = arith.addf %104, %105 : vector<8x32xf32>
    %c0_47 = arith.constant 0 : index
    %c0_48 = arith.constant 0 : index
    %c0_49 = arith.constant 0 : index
    %107 = vector.load %arg11[%c0_47, %c0_48, %c0_49] : memref<2x32x64xf32, #tpu.memory_space<vmem>>, vector<1x32x64xf32>
    %108 = vector.shape_cast %107 : vector<1x32x64xf32> to vector<32x64xf32>
    %cst_50 = arith.constant dense<0.000000e+00> : vector<8x64xf32>
    %109 = tpu.matmul %106, %108, %cst_50 {dimension_numbers = #tpu.dot_dimension_numbers<[1], [0], [0], [1], [0, 0, 1, 1], [], []>} : vector<8x32xf32>, vector<32x64xf32>, vector<8x64xf32> -> vector<8x64xf32>
    %c0_51 = arith.constant 0 : index
    %c0_52 = arith.constant 0 : index
    %c0_53 = arith.constant 0 : index
    %110 = vector.load %arg12[%c0_51, %c0_52, %c0_53] : memref<2x1x64xf32, #tpu.memory_space<vmem>>, vector<1x1x64xf32>
    %111 = vector.shape_cast %110 : vector<1x1x64xf32> to vector<1x64xf32>
    %112 = vector.broadcast %111 : vector<1x64xf32> to vector<8x64xf32>
    %113 = arith.addf %109, %112 : vector<8x64xf32>
    %cst_54 = arith.constant 5.000000e-01 : f32
    %114 = vector.broadcast %cst_54 : f32 to vector<8x64xf32>
    %115 = arith.mulf %114, %113 : vector<8x64xf32>
    %cst_55 = arith.constant 4.471500e-02 : f32
    %116 = vector.broadcast %cst_55 : f32 to vector<8x64xf32>
    %117 = arith.mulf %116, %113 : vector<8x64xf32>
    %118 = arith.mulf %117, %113 : vector<8x64xf32>
    %119 = arith.mulf %118, %113 : vector<8x64xf32>
    %120 = arith.addf %113, %119 : vector<8x64xf32>
    %cst_56 = arith.constant 0.797884583 : f32
    %121 = vector.broadcast %cst_56 : f32 to vector<8x64xf32>
    %122 = arith.mulf %121, %120 : vector<8x64xf32>
    %123 = math.tanh %122 : vector<8x64xf32>
    %cst_57 = arith.constant 1.000000e+00 : f32
    %124 = vector.broadcast %cst_57 : f32 to vector<8x64xf32>
    %125 = arith.addf %124, %123 : vector<8x64xf32>
    %126 = arith.mulf %115, %125 : vector<8x64xf32>
    %c0_58 = arith.constant 0 : index
    %c0_59 = arith.constant 0 : index
    %c0_60 = arith.constant 0 : index
    %127 = vector.load %arg13[%c0_58, %c0_59, %c0_60] : memref<2x64x32xf32, #tpu.memory_space<vmem>>, vector<1x64x32xf32>
    %128 = vector.shape_cast %127 : vector<1x64x32xf32> to vector<64x32xf32>
    %cst_61 = arith.constant dense<0.000000e+00> : vector<8x32xf32>
    %129 = tpu.matmul %126, %128, %cst_61 {dimension_numbers = #tpu.dot_dimension_numbers<[1], [0], [0], [1], [0, 0, 1, 1], [], []>} : vector<8x64xf32>, vector<64x32xf32>, vector<8x32xf32> -> vector<8x32xf32>
    %c0_62 = arith.constant 0 : index
    %c0_63 = arith.constant 0 : index
    %c0_64 = arith.constant 0 : index
    %130 = vector.load %arg14[%c0_62, %c0_63, %c0_64] : memref<2x1x32xf32, #tpu.memory_space<vmem>>, vector<1x1x32xf32>
    %131 = vector.shape_cast %130 : vector<1x1x32xf32> to vector<1x32xf32>
    %132 = vector.broadcast %131 : vector<1x32xf32> to vector<8x32xf32>
    %133 = arith.addf %129, %132 : vector<8x32xf32>
    %134 = arith.addf %133, %106 : vector<8x32xf32>
    %c0_65 = arith.constant 0 : index
    %c0_66 = arith.constant 0 : index
    %c0_67 = arith.constant 0 : index
    %135 = vector.load %arg15[%c0_65, %c0_66, %c0_67] : memref<2x1x32xf32, #tpu.memory_space<vmem>>, vector<1x1x32xf32>
    %136 = vector.shape_cast %135 : vector<1x1x32xf32> to vector<1x32xf32>
    %c0_68 = arith.constant 0 : index
    %c0_69 = arith.constant 0 : index
    %c0_70 = arith.constant 0 : index
    %137 = vector.load %arg16[%c0_68, %c0_69, %c0_70] : memref<2x1x32xf32, #tpu.memory_space<vmem>>, vector<1x1x32xf32>
    %138 = vector.shape_cast %137 : vector<1x1x32xf32> to vector<1x32xf32>
    %cst_71 = arith.constant dense<0.000000e+00> : vector<8xf32>
    %139 = vector.multi_reduction <add>, %134, %cst_71 [1] : vector<8x32xf32> to vector<8xf32>
    %140 = vector.shape_cast %139 : vector<8xf32> to vector<8x1xf32>
    %cst_72 = arith.constant 3.200000e+01 : f32
    %141 = vector.broadcast %cst_72 : f32 to vector<8x1xf32>
    %142 = arith.divf %140, %141 : vector<8x1xf32>
    %143 = vector.broadcast %142 : vector<8x1xf32> to vector<8x32xf32>
    %144 = arith.subf %134, %143 : vector<8x32xf32>
    %145 = arith.mulf %144, %144 : vector<8x32xf32>
    %cst_73 = arith.constant dense<0.000000e+00> : vector<8xf32>
    %146 = vector.multi_reduction <add>, %145, %cst_73 [1] : vector<8x32xf32> to vector<8xf32>
    %147 = vector.shape_cast %146 : vector<8xf32> to vector<8x1xf32>
    %cst_74 = arith.constant 3.200000e+01 : f32
    %148 = vector.broadcast %cst_74 : f32 to vector<8x1xf32>
    %149 = arith.divf %147, %148 : vector<8x1xf32>
    %150 = vector.broadcast %142 : vector<8x1xf32> to vector<8x32xf32>
    %151 = arith.subf %134, %150 : vector<8x32xf32>
    %cst_75 = arith.constant 9.99999996E-13 : f32
    %152 = vector.broadcast %cst_75 : f32 to vector<8x1xf32>
    %153 = arith.addf %149, %152 : vector<8x1xf32>
    %154 = math.rsqrt %153 : vector<8x1xf32>
    %155 = vector.broadcast %154 : vector<8x1xf32> to vector<8x32xf32>
    %156 = arith.mulf %151, %155 : vector<8x32xf32>
    %157 = vector.broadcast %136 : vector<1x32xf32> to vector<8x32xf32>
    %158 = arith.mulf %156, %157 : vector<8x32xf32>
    %159 = vector.broadcast %138 : vector<1x32xf32> to vector<8x32xf32>
    %160 = arith.addf %158, %159 : vector<8x32xf32>
    %c1 = arith.constant 1 : index
    %c0_76 = arith.constant 0 : index
    %c0_77 = arith.constant 0 : index
    %161 = vector.load %arg5[%c1, %c0_76, %c0_77] : memref<2x32x96xf32, #tpu.memory_space<vmem>>, vector<1x32x96xf32>
    %162 = vector.shape_cast %161 : vector<1x32x96xf32> to vector<32x96xf32>
    %cst_78 = arith.constant dense<0.000000e+00> : vector<8x96xf32>
    %163 = tpu.matmul %160, %162, %cst_78 {dimension_numbers = #tpu.dot_dimension_numbers<[1], [0], [0], [1], [0, 0, 1, 1], [], []>} : vector<8x32xf32>, vector<32x96xf32>, vector<8x96xf32> -> vector<8x96xf32>
    %c1_79 = arith.constant 1 : index
    %c0_80 = arith.constant 0 : index
    %c0_81 = arith.constant 0 : index
    %164 = vector.load %arg6[%c1_79, %c0_80, %c0_81] : memref<2x1x96xf32, #tpu.memory_space<vmem>>, vector<1x1x96xf32>
    %165 = vector.shape_cast %164 : vector<1x1x96xf32> to vector<1x96xf32>
    %166 = vector.broadcast %165 : vector<1x96xf32> to vector<8x96xf32>
    %167 = arith.addf %163, %166 : vector<8x96xf32>
    %168 = vector.extract_strided_slice %167 {offsets = [0, 0], sizes = [8, 32], strides = [1, 1]} : vector<8x96xf32> to vector<8x32xf32>
    %cst_82 = arith.constant 2.500000e-01 : f32
    %169 = vector.broadcast %cst_82 : f32 to vector<8x32xf32>
    %170 = arith.mulf %168, %169 : vector<8x32xf32>
    %171 = vector.extract_strided_slice %170 {offsets = [0, 0], sizes = [8, 16], strides = [1, 1]} : vector<8x32xf32> to vector<8x16xf32>
    %172 = vector.extract_strided_slice %167 {offsets = [0, 32], sizes = [8, 16], strides = [1, 1]} : vector<8x96xf32> to vector<8x16xf32>
    %173 = vector.extract_strided_slice %167 {offsets = [0, 64], sizes = [8, 16], strides = [1, 1]} : vector<8x96xf32> to vector<8x16xf32>
    "tpu.trace_start"() <{level = 10 : i32, message = "qd,kd->qk"}> : () -> ()
    %cst_83 = arith.constant dense<0.000000e+00> : vector<8x8xf32>
    %174 = tpu.matmul %171, %172, %cst_83 {dimension_numbers = #tpu.dot_dimension_numbers<[1], [1], [0], [0], [0, 0, 1, 0], [], []>} : vector<8x16xf32>, vector<8x16xf32>, vector<8x8xf32> -> vector<8x8xf32>
    "tpu.trace_stop"() : () -> ()
    %175 = vector.broadcast %27 : vector<1x8xf32> to vector<8x8xf32>
    %176 = arith.addf %174, %175 : vector<8x8xf32>
    %cst_84 = arith.constant dense<0xFF800000> : vector<8xf32>
    %177 = vector.multi_reduction <maximumf>, %176, %cst_84 [1] : vector<8x8xf32> to vector<8xf32>
    %178 = vector.shape_cast %177 : vector<8xf32> to vector<8x1xf32>
    %179 = vector.broadcast %178 : vector<8x1xf32> to vector<8x8xf32>
    %180 = arith.subf %176, %179 : vector<8x8xf32>
    %181 = math.exp %180 : vector<8x8xf32>
    %cst_85 = arith.constant dense<0.000000e+00> : vector<8xf32>
    %182 = vector.multi_reduction <add>, %181, %cst_85 [1] : vector<8x8xf32> to vector<8xf32>
    %183 = vector.shape_cast %182 : vector<8xf32> to vector<8x1xf32>
    %184 = tpu.reciprocal %183 {approx = true} : vector<8x1xf32> -> vector<8x1xf32>
    %185 = vector.broadcast %184 : vector<8x1xf32> to vector<8x8xf32>
    %186 = arith.mulf %181, %185 : vector<8x8xf32>
    %cst_86 = arith.constant dense<0.000000e+00> : vector<8x16xf32>
    %187 = tpu.matmul %186, %173, %cst_86 {dimension_numbers = #tpu.dot_dimension_numbers<[1], [0], [0], [1], [0, 0, 1, 1], [], []>} : vector<8x8xf32>, vector<8x16xf32>, vector<8x16xf32> -> vector<8x16xf32>
    %188 = vector.extract_strided_slice %170 {offsets = [0, 16], sizes = [8, 16], strides = [1, 1]} : vector<8x32xf32> to vector<8x16xf32>
    %189 = vector.extract_strided_slice %167 {offsets = [0, 48], sizes = [8, 16], strides = [1, 1]} : vector<8x96xf32> to vector<8x16xf32>
    %190 = vector.extract_strided_slice %167 {offsets = [0, 80], sizes = [8, 16], strides = [1, 1]} : vector<8x96xf32> to vector<8x16xf32>
    "tpu.trace_start"() <{level = 10 : i32, message = "qd,kd->qk"}> : () -> ()
    %cst_87 = arith.constant dense<0.000000e+00> : vector<8x8xf32>
    %191 = tpu.matmul %188, %189, %cst_87 {dimension_numbers = #tpu.dot_dimension_numbers<[1], [1], [0], [0], [0, 0, 1, 0], [], []>} : vector<8x16xf32>, vector<8x16xf32>, vector<8x8xf32> -> vector<8x8xf32>
    "tpu.trace_stop"() : () -> ()
    %192 = vector.broadcast %27 : vector<1x8xf32> to vector<8x8xf32>
    %193 = arith.addf %191, %192 : vector<8x8xf32>
    %cst_88 = arith.constant dense<0xFF800000> : vector<8xf32>
    %194 = vector.multi_reduction <maximumf>, %193, %cst_88 [1] : vector<8x8xf32> to vector<8xf32>
    %195 = vector.shape_cast %194 : vector<8xf32> to vector<8x1xf32>
    %196 = vector.broadcast %195 : vector<8x1xf32> to vector<8x8xf32>
    %197 = arith.subf %193, %196 : vector<8x8xf32>
    %198 = math.exp %197 : vector<8x8xf32>
    %cst_89 = arith.constant dense<0.000000e+00> : vector<8xf32>
    %199 = vector.multi_reduction <add>, %198, %cst_89 [1] : vector<8x8xf32> to vector<8xf32>
    %200 = vector.shape_cast %199 : vector<8xf32> to vector<8x1xf32>
    %201 = tpu.reciprocal %200 {approx = true} : vector<8x1xf32> -> vector<8x1xf32>
    %202 = vector.broadcast %201 : vector<8x1xf32> to vector<8x8xf32>
    %203 = arith.mulf %198, %202 : vector<8x8xf32>
    %cst_90 = arith.constant dense<0.000000e+00> : vector<8x16xf32>
    %204 = tpu.matmul %203, %190, %cst_90 {dimension_numbers = #tpu.dot_dimension_numbers<[1], [0], [0], [1], [0, 0, 1, 1], [], []>} : vector<8x8xf32>, vector<8x16xf32>, vector<8x16xf32> -> vector<8x16xf32>
    %205 = tpu.concatenate %187, %204 in 1 : vector<8x16xf32>, vector<8x16xf32> -> vector<8x32xf32>
    %c1_91 = arith.constant 1 : index
    %c0_92 = arith.constant 0 : index
    %c0_93 = arith.constant 0 : index
    %206 = vector.load %arg7[%c1_91, %c0_92, %c0_93] : memref<2x32x32xf32, #tpu.memory_space<vmem>>, vector<1x32x32xf32>
    %207 = vector.shape_cast %206 : vector<1x32x32xf32> to vector<32x32xf32>
    %cst_94 = arith.constant dense<0.000000e+00> : vector<8x32xf32>
    %208 = tpu.matmul %205, %207, %cst_94 {dimension_numbers = #tpu.dot_dimension_numbers<[1], [0], [0], [1], [0, 0, 1, 1], [], []>} : vector<8x32xf32>, vector<32x32xf32>, vector<8x32xf32> -> vector<8x32xf32>
    %c1_95 = arith.constant 1 : index
    %c0_96 = arith.constant 0 : index
    %c0_97 = arith.constant 0 : index
    %209 = vector.load %arg8[%c1_95, %c0_96, %c0_97] : memref<2x1x32xf32, #tpu.memory_space<vmem>>, vector<1x1x32xf32>
    %210 = vector.shape_cast %209 : vector<1x1x32xf32> to vector<1x32xf32>
    %211 = vector.broadcast %210 : vector<1x32xf32> to vector<8x32xf32>
    %212 = arith.addf %208, %211 : vector<8x32xf32>
    %213 = arith.addf %212, %160 : vector<8x32xf32>
    %c1_98 = arith.constant 1 : index
    %c0_99 = arith.constant 0 : index
    %c0_100 = arith.constant 0 : index
    %214 = vector.load %arg9[%c1_98, %c0_99, %c0_100] : memref<2x1x32xf32, #tpu.memory_space<vmem>>, vector<1x1x32xf32>
    %215 = vector.shape_cast %214 : vector<1x1x32xf32> to vector<1x32xf32>
    %c1_101 = arith.constant 1 : index
    %c0_102 = arith.constant 0 : index
    %c0_103 = arith.constant 0 : index
    %216 = vector.load %arg10[%c1_101, %c0_102, %c0_103] : memref<2x1x32xf32, #tpu.memory_space<vmem>>, vector<1x1x32xf32>
    %217 = vector.shape_cast %216 : vector<1x1x32xf32> to vector<1x32xf32>
    %cst_104 = arith.constant dense<0.000000e+00> : vector<8xf32>
    %218 = vector.multi_reduction <add>, %213, %cst_104 [1] : vector<8x32xf32> to vector<8xf32>
    %219 = vector.shape_cast %218 : vector<8xf32> to vector<8x1xf32>
    %cst_105 = arith.constant 3.200000e+01 : f32
    %220 = vector.broadcast %cst_105 : f32 to vector<8x1xf32>
    %221 = arith.divf %219, %220 : vector<8x1xf32>
    %222 = vector.broadcast %221 : vector<8x1xf32> to vector<8x32xf32>
    %223 = arith.subf %213, %222 : vector<8x32xf32>
    %224 = arith.mulf %223, %223 : vector<8x32xf32>
    %cst_106 = arith.constant dense<0.000000e+00> : vector<8xf32>
    %225 = vector.multi_reduction <add>, %224, %cst_106 [1] : vector<8x32xf32> to vector<8xf32>
    %226 = vector.shape_cast %225 : vector<8xf32> to vector<8x1xf32>
    %cst_107 = arith.constant 3.200000e+01 : f32
    %227 = vector.broadcast %cst_107 : f32 to vector<8x1xf32>
    %228 = arith.divf %226, %227 : vector<8x1xf32>
    %229 = vector.broadcast %221 : vector<8x1xf32> to vector<8x32xf32>
    %230 = arith.subf %213, %229 : vector<8x32xf32>
    %cst_108 = arith.constant 9.99999996E-13 : f32
    %231 = vector.broadcast %cst_108 : f32 to vector<8x1xf32>
    %232 = arith.addf %228, %231 : vector<8x1xf32>
    %233 = math.rsqrt %232 : vector<8x1xf32>
    %234 = vector.broadcast %233 : vector<8x1xf32> to vector<8x32xf32>
    %235 = arith.mulf %230, %234 : vector<8x32xf32>
    %236 = vector.broadcast %215 : vector<1x32xf32> to vector<8x32xf32>
    %237 = arith.mulf %235, %236 : vector<8x32xf32>
    %238 = vector.broadcast %217 : vector<1x32xf32> to vector<8x32xf32>
    %239 = arith.addf %237, %238 : vector<8x32xf32>
    %c1_109 = arith.constant 1 : index
    %c0_110 = arith.constant 0 : index
    %c0_111 = arith.constant 0 : index
    %240 = vector.load %arg11[%c1_109, %c0_110, %c0_111] : memref<2x32x64xf32, #tpu.memory_space<vmem>>, vector<1x32x64xf32>
    %241 = vector.shape_cast %240 : vector<1x32x64xf32> to vector<32x64xf32>
    %cst_112 = arith.constant dense<0.000000e+00> : vector<8x64xf32>
    %242 = tpu.matmul %239, %241, %cst_112 {dimension_numbers = #tpu.dot_dimension_numbers<[1], [0], [0], [1], [0, 0, 1, 1], [], []>} : vector<8x32xf32>, vector<32x64xf32>, vector<8x64xf32> -> vector<8x64xf32>
    %c1_113 = arith.constant 1 : index
    %c0_114 = arith.constant 0 : index
    %c0_115 = arith.constant 0 : index
    %243 = vector.load %arg12[%c1_113, %c0_114, %c0_115] : memref<2x1x64xf32, #tpu.memory_space<vmem>>, vector<1x1x64xf32>
    %244 = vector.shape_cast %243 : vector<1x1x64xf32> to vector<1x64xf32>
    %245 = vector.broadcast %244 : vector<1x64xf32> to vector<8x64xf32>
    %246 = arith.addf %242, %245 : vector<8x64xf32>
    %cst_116 = arith.constant 5.000000e-01 : f32
    %247 = vector.broadcast %cst_116 : f32 to vector<8x64xf32>
    %248 = arith.mulf %247, %246 : vector<8x64xf32>
    %cst_117 = arith.constant 4.471500e-02 : f32
    %249 = vector.broadcast %cst_117 : f32 to vector<8x64xf32>
    %250 = arith.mulf %249, %246 : vector<8x64xf32>
    %251 = arith.mulf %250, %246 : vector<8x64xf32>
    %252 = arith.mulf %251, %246 : vector<8x64xf32>
    %253 = arith.addf %246, %252 : vector<8x64xf32>
    %cst_118 = arith.constant 0.797884583 : f32
    %254 = vector.broadcast %cst_118 : f32 to vector<8x64xf32>
    %255 = arith.mulf %254, %253 : vector<8x64xf32>
    %256 = math.tanh %255 : vector<8x64xf32>
    %cst_119 = arith.constant 1.000000e+00 : f32
    %257 = vector.broadcast %cst_119 : f32 to vector<8x64xf32>
    %258 = arith.addf %257, %256 : vector<8x64xf32>
    %259 = arith.mulf %248, %258 : vector<8x64xf32>
    %c1_120 = arith.constant 1 : index
    %c0_121 = arith.constant 0 : index
    %c0_122 = arith.constant 0 : index
    %260 = vector.load %arg13[%c1_120, %c0_121, %c0_122] : memref<2x64x32xf32, #tpu.memory_space<vmem>>, vector<1x64x32xf32>
    %261 = vector.shape_cast %260 : vector<1x64x32xf32> to vector<64x32xf32>
    %cst_123 = arith.constant dense<0.000000e+00> : vector<8x32xf32>
    %262 = tpu.matmul %259, %261, %cst_123 {dimension_numbers = #tpu.dot_dimension_numbers<[1], [0], [0], [1], [0, 0, 1, 1], [], []>} : vector<8x64xf32>, vector<64x32xf32>, vector<8x32xf32> -> vector<8x32xf32>
    %c1_124 = arith.constant 1 : index
    %c0_125 = arith.constant 0 : index
    %c0_126 = arith.constant 0 : index
    %263 = vector.load %arg14[%c1_124, %c0_125, %c0_126] : memref<2x1x32xf32, #tpu.memory_space<vmem>>, vector<1x1x32xf32>
    %264 = vector.shape_cast %263 : vector<1x1x32xf32> to vector<1x32xf32>
    %265 = vector.broadcast %264 : vector<1x32xf32> to vector<8x32xf32>
    %266 = arith.addf %262, %265 : vector<8x32xf32>
    %267 = arith.addf %266, %239 : vector<8x32xf32>
    %c1_127 = arith.constant 1 : index
    %c0_128 = arith.constant 0 : index
    %c0_129 = arith.constant 0 : index
    %268 = vector.load %arg15[%c1_127, %c0_128, %c0_129] : memref<2x1x32xf32, #tpu.memory_space<vmem>>, vector<1x1x32xf32>
    %269 = vector.shape_cast %268 : vector<1x1x32xf32> to vector<1x32xf32>
    %c1_130 = arith.constant 1 : index
    %c0_131 = arith.constant 0 : index
    %c0_132 = arith.constant 0 : index
    %270 = vector.load %arg16[%c1_130, %c0_131, %c0_132] : memref<2x1x32xf32, #tpu.memory_space<vmem>>, vector<1x1x32xf32>
    %271 = vector.shape_cast %270 : vector<1x1x32xf32> to vector<1x32xf32>
    %cst_133 = arith.constant dense<0.000000e+00> : vector<8xf32>
    %272 = vector.multi_reduction <add>, %267, %cst_133 [1] : vector<8x32xf32> to vector<8xf32>
    %273 = vector.shape_cast %272 : vector<8xf32> to vector<8x1xf32>
    %cst_134 = arith.constant 3.200000e+01 : f32
    %274 = vector.broadcast %cst_134 : f32 to vector<8x1xf32>
    %275 = arith.divf %273, %274 : vector<8x1xf32>
    %276 = vector.broadcast %275 : vector<8x1xf32> to vector<8x32xf32>
    %277 = arith.subf %267, %276 : vector<8x32xf32>
    %278 = arith.mulf %277, %277 : vector<8x32xf32>
    %cst_135 = arith.constant dense<0.000000e+00> : vector<8xf32>
    %279 = vector.multi_reduction <add>, %278, %cst_135 [1] : vector<8x32xf32> to vector<8xf32>
    %280 = vector.shape_cast %279 : vector<8xf32> to vector<8x1xf32>
    %cst_136 = arith.constant 3.200000e+01 : f32
    %281 = vector.broadcast %cst_136 : f32 to vector<8x1xf32>
    %282 = arith.divf %280, %281 : vector<8x1xf32>
    %283 = vector.broadcast %275 : vector<8x1xf32> to vector<8x32xf32>
    %284 = arith.subf %267, %283 : vector<8x32xf32>
    %cst_137 = arith.constant 9.99999996E-13 : f32
    %285 = vector.broadcast %cst_137 : f32 to vector<8x1xf32>
    %286 = arith.addf %282, %285 : vector<8x1xf32>
    %287 = math.rsqrt %286 : vector<8x1xf32>
    %288 = vector.broadcast %287 : vector<8x1xf32> to vector<8x32xf32>
    %289 = arith.mulf %284, %288 : vector<8x32xf32>
    %290 = vector.broadcast %269 : vector<1x32xf32> to vector<8x32xf32>
    %291 = arith.mulf %289, %290 : vector<8x32xf32>
    %292 = vector.broadcast %271 : vector<1x32xf32> to vector<8x32xf32>
    %293 = arith.addf %291, %292 : vector<8x32xf32>
    %c0_138 = arith.constant 0 : index
    %c0_139 = arith.constant 0 : index
    %c0_140 = arith.constant 0 : index
    %294 = vector.load %arg19[%c0_138, %c0_139, %c0_140] : memref<1x8x32xf32, #tpu.memory_space<vmem>>, vector<1x8x32xf32>
    %295 = vector.shape_cast %294 : vector<1x8x32xf32> to vector<8x32xf32>
    %296 = vector.shape_cast %293 : vector<8x32xf32> to vector<1x8x32xf32>
    tpu.vector_store %arg19[%c0_138, %c0_139, %c0_140], %296 {strides = array<i32>} : memref<1x8x32xf32, #tpu.memory_space<vmem>>, vector<1x8x32xf32>,
    %297 = vector.extract_strided_slice %293 {offsets = [0, 0], sizes = [1, 32], strides = [1, 1]} : vector<8x32xf32> to vector<1x32xf32>
    %c0_141 = arith.constant 0 : index
    %c0_142 = arith.constant 0 : index
    %298 = vector.load %arg17[%c0_141, %c0_142] : memref<32x32xf32, #tpu.memory_space<vmem>>, vector<32x32xf32>
    %cst_143 = arith.constant dense<0.000000e+00> : vector<1x32xf32>
    %299 = tpu.matmul %297, %298, %cst_143 {dimension_numbers = #tpu.dot_dimension_numbers<[1], [0], [0], [1], [0, 0, 1, 1], [], []>} : vector<1x32xf32>, vector<32x32xf32>, vector<1x32xf32> -> vector<1x32xf32>
    %c0_144 = arith.constant 0 : index
    %c0_145 = arith.constant 0 : index
    %300 = vector.load %arg18[%c0_144, %c0_145] : memref<1x32xf32, #tpu.memory_space<vmem>>, vector<1x32xf32>
    %301 = arith.addf %299, %300 : vector<1x32xf32>
    %302 = math.tanh %301 : vector<1x32xf32>
    %c0_146 = arith.constant 0 : index
    %c0_147 = arith.constant 0 : index
    %c0_148 = arith.constant 0 : index
    %303 = vector.load %arg20[%c0_146, %c0_147, %c0_148] : memref<1x1x32xf32, #tpu.memory_space<vmem>>, vector<1x1x32xf32>
    %304 = vector.shape_cast %303 : vector<1x1x32xf32> to vector<1x32xf32>
    %305 = vector.shape_cast %302 : vector<1x32xf32> to vector<1x1x32xf32>
    tpu.vector_store %arg20[%c0_146, %c0_147, %c0_148], %305 {strides = array<i32>} : memref<1x1x32xf32, #tpu.memory_space<vmem>>, vector<1x1x32xf32>,
    return
  }
  func.func @transform_0(%arg0: i32) -> (i32, i32, i32) {
    %c0_i32 = arith.constant 0 : i32
    %c0_i32_0 = arith.constant 0 : i32
    %c0_i32_1 = arith.constant 0 : i32
    return %arg0, %c0_i32, %c0_i32_0 : i32, i32, i32
  }
  func.func @transform_1(%arg0: i32) -> (i32, i32, i32) {
    %c0_i32 = arith.constant 0 : i32
    %c0_i32_0 = arith.constant 0 : i32
    %c0_i32_1 = arith.constant 0 : i32
    return %arg0, %c0_i32, %c0_i32_0 : i32, i32, i32
  }
  func.func @transform_2(%arg0: i32) -> (i32, i32) {
    %c0_i32 = arith.constant 0 : i32
    %c0_i32_0 = arith.constant 0 : i32
    %c0_i32_1 = arith.constant 0 : i32
    return %c0_i32, %c0_i32_0 : i32, i32
  }
  func.func @transform_3(%arg0: i32) -> (i32, i32) {
    %c0_i32 = arith.constant 0 : i32
    %c0_i32_0 = arith.constant 0 : i32
    %c0_i32_1 = arith.constant 0 : i32
    return %c0_i32, %c0_i32_0 : i32, i32
  }
  func.func @transform_4(%arg0: i32) -> (i32, i32, i32) {
    %c0_i32 = arith.constant 0 : i32
    %c0_i32_0 = arith.constant 0 : i32
    %c0_i32_1 = arith.constant 0 : i32
    %c0_i32_2 = arith.constant 0 : i32
    return %c0_i32, %c0_i32_0, %c0_i32_1 : i32, i32, i32
  }
  func.func @transform_5(%arg0: i32) -> (i32, i32, i32) {
    %c0_i32 = arith.constant 0 : i32
    %c0_i32_0 = arith.constant 0 : i32
    %c0_i32_1 = arith.constant 0 : i32
    %c0_i32_2 = arith.constant 0 : i32
    return %c0_i32, %c0_i32_0, %c0_i32_1 : i32, i32, i32
  }
  func.func @transform_6(%arg0: i32) -> (i32, i32, i32) {
    %c0_i32 = arith.constant 0 : i32
    %c0_i32_0 = arith.constant 0 : i32
    %c0_i32_1 = arith.constant 0 : i32
    %c0_i32_2 = arith.constant 0 : i32
    return %c0_i32, %c0_i32_0, %c0_i32_1 : i32, i32, i32
  }
  func.func @transform_7(%arg0: i32) -> (i32, i32, i32) {
    %c0_i32 = arith.constant 0 : i32
    %c0_i32_0 = arith.constant 0 : i32
    %c0_i32_1 = arith.constant 0 : i32
    %c0_i32_2 = arith.constant 0 : i32
    return %c0_i32, %c0_i32_0, %c0_i32_1 : i32, i32, i32
  }
  func.func @transform_8(%arg0: i32) -> (i32, i32, i32) {
    %c0_i32 = arith.constant 0 : i32
    %c0_i32_0 = arith.constant 0 : i32
    %c0_i32_1 = arith.constant 0 : i32
    %c0_i32_2 = arith.constant 0 : i32
    return %c0_i32, %c0_i32_0, %c0_i32_1 : i32, i32, i32
  }
  func.func @transform_9(%arg0: i32) -> (i32, i32, i32) {
    %c0_i32 = arith.constant 0 : i32
    %c0_i32_0 = arith.constant 0 : i32
    %c0_i32_1 = arith.constant 0 : i32
    %c0_i32_2 = arith.constant 0 : i32
    return %c0_i32, %c0_i32_0, %c0_i32_1 : i32, i32, i32
  }
  func.func @transform_10(%arg0: i32) -> (i32, i32, i32) {
    %c0_i32 = arith.constant 0 : i32
    %c0_i32_0 = arith.constant 0 : i32
    %c0_i32_1 = arith.constant 0 : i32
    %c0_i32_2 = arith.constant 0 : i32
    return %c0_i32, %c0_i32_0, %c0_i32_1 : i32, i32, i32
  }
  func.func @transform_11(%arg0: i32) -> (i32, i32, i32) {
    %c0_i32 = arith.constant 0 : i32
    %c0_i32_0 = arith.constant 0 : i32
    %c0_i32_1 = arith.constant 0 : i32
    %c0_i32_2 = arith.constant 0 : i32
    return %c0_i32, %c0_i32_0, %c0_i32_1 : i32, i32, i32
  }
  func.func @transform_12(%arg0: i32) -> (i32, i32, i32) {
    %c0_i32 = arith.constant 0 : i32
    %c0_i32_0 = arith.constant 0 : i32
    %c0_i32_1 = arith.constant 0 : i32
    %c0_i32_2 = arith.constant 0 : i32
    return %c0_i32, %c0_i32_0, %c0_i32_1 : i32, i32, i32
  }
  func.func @transform_13(%arg0: i32) -> (i32, i32, i32) {
    %c0_i32 = arith.constant 0 : i32
    %c0_i32_0 = arith.constant 0 : i32
    %c0_i32_1 = arith.constant 0 : i32
    %c0_i32_2 = arith.constant 0 : i32
    return %c0_i32, %c0_i32_0, %c0_i32_1 : i32, i32, i32
  }
  func.func @transform_14(%arg0: i32) -> (i32, i32, i32) {
    %c0_i32 = arith.constant 0 : i32
    %c0_i32_0 = arith.constant 0 : i32
    %c0_i32_1 = arith.constant 0 : i32
    %c0_i32_2 = arith.constant 0 : i32
    return %c0_i32, %c0_i32_0, %c0_i32_1 : i32, i32, i32
  }
  func.func @transform_15(%arg0: i32) -> (i32, i32, i32) {
    %c0_i32 = arith.constant 0 : i32
    %c0_i32_0 = arith.constant 0 : i32
    %c0_i32_1 = arith.constant 0 : i32
    %c0_i32_2 = arith.constant 0 : i32
    return %c0_i32, %c0_i32_0, %c0_i32_1 : i32, i32, i32
  }
  func.func @transform_16(%arg0: i32) -> (i32, i32) {
    %c0_i32 = arith.constant 0 : i32
    %c0_i32_0 = arith.constant 0 : i32
    %c0_i32_1 = arith.constant 0 : i32
    return %c0_i32, %c0_i32_0 : i32, i32
  }
  func.func @transform_17(%arg0: i32) -> (i32, i32) {
    %c0_i32 = arith.constant 0 : i32
    %c0_i32_0 = arith.constant 0 : i32
    %c0_i32_1 = arith.constant 0 : i32
    return %c0_i32, %c0_i32_0 : i32, i32
  }
  func.func @transform_18(%arg0: i32) -> (i32, i32, i32) {
    %c0_i32 = arith.constant 0 : i32
    %c0_i32_0 = arith.constant 0 : i32
    %c0_i32_1 = arith.constant 0 : i32
    return %arg0, %c0_i32, %c0_i32_0 : i32, i32, i32
  }
  func.func @transform_19(%arg0: i32) -> (i32, i32, i32) {
    %c0_i32 = arith.constant 0 : i32
    %c0_i32_0 = arith.constant 0 : i32
    %c0_i32_1 = arith.constant 0 : i32
    return %arg0, %c0_i32, %c0_i32_0 : i32, i32, i32
  }
}

</mosaic_0001>

<bundles_post_ra>
// kernel: tpu_custom_call.1
= control target key start
LH: loop header
LB: loop body
LE: loop exit
PB: predicated region body
PF: predicated region fallthrough
CT: control target
= control target key end

     0   :  { %s4168_s0 = inlined_call_operand.hbm [shape: f32[2,8,32], index: 0, kind: input, shape index: {}]   ;;  %s4169_s1 = inlined_call_operand.vmem [shape: f32[2,1,8], index: 1, kind: input, shape index: {}]   ;;  %s4170_s2 = inlined_call_operand.hbm [shape: f32[1,32], index: 2, kind: input, shape index: {}]   ;;  %s4171_s3 = inlined_call_operand.hbm [shape: f32[1,32], index: 3, kind: input, shape index: {}]   ;;  %s4172_s4 = inlined_call_operand.vmem [shape: f32[2,32,96], index: 4, kind: input, shape index: {}]   ;;  %s4173_s5 = inlined_call_operand.hbm [shape: f32[2,1,96], index: 5, kind: input, shape index: {}]   ;;  %s4174_s6 = inlined_call_operand.vmem [shape: f32[2,32,32], index: 6, kind: input, shape index: {}]   ;;  %s4175_s7 = inlined_call_operand.hbm [shape: f32[2,1,32], index: 7, kind: input, shape index: {}]   ;;  %s4176_s8 = inlined_call_operand.hbm [shape: f32[2,1,32], index: 8, kind: input, shape index: {}]   ;;  %s4177_s9 = inlined_call_operand.hbm [shape: f32[2,1,32], index: 9, kind: input, shape index: {}]   ;;  %s4178_s10 = inlined_call_operand.vmem [shape: f32[2,32,64], index: 10, kind: input, shape index: {}]   ;;  %s4179_s11 = inlined_call_operand.vmem [shape: f32[2,1,64], index: 11, kind: input, shape index: {}]   ;;  %s4180_s12 = inlined_call_operand.vmem [shape: f32[2,64,32], index: 12, kind: input, shape index: {}]   ;;  %s4181_s13 = inlined_call_operand.vmem [shape: f32[2,1,32], index: 13, kind: input, shape index: {}]   ;;  %s4182_s14 = inlined_call_operand.vmem [shape: f32[2,1,32], index: 14, kind: input, shape index: {}]   ;;  %s4183_s15 = inlined_call_operand.vmem [shape: f32[2,1,32], index: 15, kind: input, shape index: {}]   ;;  %s4184_s16 = inlined_call_operand.vmem [shape: f32[32,32], index: 16, kind: input, shape index: {}]   ;;  %s4185_s17 = inlined_call_operand.vmem [shape: f32[1,32], index: 17, kind: input, shape index: {}]   ;;  %s4186_s18 = inlined_call_operand.hbm [shape: f32[2,8,32], index: 18, kind: output, shape index: {0}]   ;;  %s4187_s19 = inlined_call_operand.hbm [shape: f32[2,1,32], index: 19, kind: output, shape index: {1}]  }
   0x1   :  { %4209 = sst [smem:[#allocation23_spill]] %s4168_s0 }
   0x2   :  { %4210 = sst [smem:[#allocation24_spill]] %s4169_s1 }
   0x3   :  { %4211 = sst [smem:[#allocation25_spill]] %s4170_s2 }
   0x4   :  { %4212 = sst [smem:[#allocation26_spill]] %s4171_s3 }
   0x5   :  { %4213 = sst [smem:[#allocation27_spill]] %s4172_s4 }
   0x6   :  { %4214 = sst [smem:[#allocation28_spill]] %s4173_s5 }
   0x7   :  { %4215 = sst [smem:[#allocation29_spill]] %s4174_s6 }
   0x8   :  { %4216 = sst [smem:[#allocation30_spill]] %s4175_s7 }
   0x9   :  { %4217 = sst [smem:[#allocation31_spill]] %s4176_s8 }
   0xa   :  { %4218 = sst [smem:[#allocation32_spill]] %s4179_s11 }
   0xb   :  { %4219 = sst [smem:[#allocation33_spill]] %s4181_s13 }
   0xc   :  { %4220 = sst [smem:[#allocation34_spill]] %s4182_s14 }
   0xd   :  { %4221 = sst [smem:[#allocation35_spill]] %s4183_s15 }
   0xe   :  { %4222 = sst [smem:[#allocation36_spill]] %s4184_s16 }
   0xf   :  { %4223 = sst [smem:[#allocation37_spill]] %s4185_s17 }
  0x10   :  { %4224 = sst [smem:[#allocation38_spill]] %s4186_s18 }
  0x11   :  { %4225 = sst [smem:[#allocation39_spill]] %s4187_s19 }
  0x12   :  { %25 = vsyncpa [#allocation3], 0 }
  0x13   :  { %27 = vsyncpa [#allocation3 + $0x1], 0 }
  0x14   :  { %28 = vsyncpa [#allocation6], 0 }
  0x15   :  { %29 = vsyncpa [#allocation9], 0 }
  0x16   :  { %30 = vsyncpa [#allocation12], 0 }
  0x17   :  { %31 = vsyncpa [#allocation4], 0 }
  0x18   :  { %33 = vsyncpa [#allocation4 + $0x1], 0 }
  0x19   :  { %34 = vsyncpa [#allocation16], 0 }
  0x1a   :  { %36 = vsyncpa [#allocation16 + $0x1], 0  ;;  %s3510_s0 = smov 0   ;;  %s3512_s30 = smov 0  }
  0x1b   :  { %s3514_s20 = smov 0   ;;  %s3516_s21 = smov 0  }
  0x1c LB: > { %s3390_s1 = smov [#allocation5]   ;;  %s3531_s2 = sadd.s32 4294967295, %s3388_s21   ;;  %s3388_s21 = sphi %s3516_s21, %s4269_s21   ;;  %s3384_s20 = sphi %s3514_s20, %s4268_s20   ;;  %s3380_s30 = sphi %s3512_s30, %s4267_s30   ;;  %s3376_s0 = sphi %s3510_s0, %s4266_s0  }
  0x1d   : > { %s500_s22 = sshll.u32 %s3390_s1, 4  ;;  %p2547_p0 = scmp.ge.s32.totalorder %s3388_s21, 1  ;;  %s3536_s22 = int_to_ptr.vmem [resolvable:$true] %s500_s22 }
  0x1e   : > { %p4199_p1 = scmp.eq.s32.totalorder %s3531_s2, 0  ;;  %p487_p2 = scmp.lt.s32.totalorder %s3388_s21, 3 }
  0x1f   : > { %s3391_s24 = smov [#allocation8]   ;;  %s3392_s26 = smov [#allocation11]  }
  0x20   : > { %p3538_p3 = pnand %p2547_p0, %p487_p2  ;;  %s524_s25 = sshll.u32 %s3391_s24, 4  ;;  %s3545_s25 = int_to_ptr.vmem [resolvable:$true] %s524_s25 }
  0x21   : > { %s553_s27 = sshll.u32 %s3392_s26, 4  ;;  %s4228_s1 = sld [smem:[#allocation25_spill]]  ;;  %s3553_s27 = int_to_ptr.vmem [resolvable:$true] %s553_s27 }
  0x22   : > { %s4226_s23 = scalar_select %p3538_p3, 1, 0 }
  0x23   : > { %p2955_p5 = pneg %p3538_p3 }
  0x25   : > { %p3549_p6 = pnand %p2955_p5, %p4199_p1 }
  0x27   : > { %s3080_s19 = scalar_lea.hbm %s4228_s1, 16  ;;  %p3563_p8 = pneg %p3549_p6 }
  0x28   : > { %p3081_p7 = scmp.ne.s32.totalorder %s4228_s1, %s3080_s19  ;;  %p3087_p11 = scmp.lt.u32.totalorder %s3080_s19, %s4228_s1 }
  0x2a   : > { %p3083_p9 = pnand %p3563_p8, %p3081_p7 }
  0x2c   : > { %p3084_p10 = pneg %p3083_p9 }
  0x2e   : > { %p3089_p12 = pnand %p3087_p11, %p3084_p10 }
  0x30   : > { %3092 = shalt.err (!%p3089_p12)
}
  0x31   : > { %s3093_s17 = scalar_lea.vmem %s3536_s22, 16  ;;  %s3100_s18 = scalar_lea.vmem %s3536_s22, 32 }
  0x32   : > { %p3094_p13 = scmp.ne.s32.totalorder %s3536_s22, %s3093_s17  ;;  %p3101_p5 = scmp.lt.s32.totalorder %s3536_s22, %s3536_s22 }
  0x33   : > { %p3102_p7 = scmp.lt.s32.totalorder %s3100_s18, %s3093_s17 }
  0x34   : > { %p3096_p0 = pnand %p3094_p13, %p3563_p8 }
  0x35   : > { %p3103_p9 = por %p3102_p7, %p3101_p5 }
  0x36   : > { %p3097_p2 = pneg %p3096_p0 }
  0x38   : > { %p3104_p4 = pnand %p3103_p9, %p3097_p2 }
  0x3a   : > { %3107 = shalt.err (!%p3104_p4)
}
  0x3b   : > { %2958 = dma.hbm_to_vmem [thread:$0]  (!%p3549_p6), %s4228_s1, 16, %s3536_s22, [#allocation6]  }
  0x3c   : > { %s4230_s5 = sld [smem:[#allocation28_spill]] }
  0x42   : > { %s3108_s26 = scalar_lea.hbm %s4230_s5, 32 }
  0x43   : > { %p3109_p10 = scmp.ne.s32.totalorder %s4230_s5, %s3108_s26  ;;  %p3115_p4 = scmp.lt.u32.totalorder %s3108_s26, %s4230_s5 }
  0x45   : > { %p3111_p11 = pnand %p3109_p10, %p3563_p8 }
  0x47   : > { %p3112_p12 = pneg %p3111_p11 }
  0x49   : > { %p3117_p13 = pnand %p3115_p4, %p3112_p12 }
  0x4b   : > { %3120 = shalt.err (!%p3117_p13)
}
  0x4c   : > { %s3121_s22 = scalar_lea.vmem %s3545_s25, 32  ;;  %p3129_p7 = scmp.lt.s32.totalorder %s3545_s25, %s3545_s25 }
  0x4d   : > { %p3122_p0 = scmp.ne.s32.totalorder %s3545_s25, %s3121_s22  ;;  %p3130_p9 = scmp.lt.s32.totalorder %s3121_s22, %s3121_s22 }
  0x4f   : > { %p3124_p2 = pnand %p3122_p0, %p3563_p8  ;;  %p3131_p10 = por %p3130_p9, %p3129_p7 }
  0x51   : > { %p3125_p5 = pneg %p3124_p2 }
  0x53   : > { %p3132_p11 = pnand %p3131_p10, %p3125_p5 }
  0x55   : > { %3135 = shalt.err (!%p3132_p11)
}
  0x56   : > { %s3393_s14 = smov 16   ;;  %s3394_s15 = smov 1  }
  0x57   : > { %2964 = dma.hbm_to_vmem [thread:$0]  (!%p3549_p6), %s4230_s5, 32, %s3545_s25, [#allocation9], %s3393_s14, %s3393_s14, %s3394_s15  }
  0x58   : > { %s4231_s8 = sld [smem:[#allocation31_spill]] }
  0x5e   : > { %s3136_s26 = scalar_lea.hbm %s4231_s8, 32 }
  0x5f   : > { %p3137_p12 = scmp.ne.s32.totalorder %s4231_s8, %s3136_s26  ;;  %p3143_p0 = scmp.lt.u32.totalorder %s3136_s26, %s4231_s8 }
  0x61   : > { %p3139_p4 = pnand %p3137_p12, %p3563_p8 }
  0x63   : > { %p3140_p13 = pneg %p3139_p4 }
  0x65   : > { %p3145_p2 = pnand %p3143_p0, %p3140_p13 }
  0x67   : > { %3148 = shalt.err (!%p3145_p2)
}
  0x68   : > { %s3149_s25 = scalar_lea.vmem %s3553_s27, 32  ;;  %p3157_p10 = scmp.lt.s32.totalorder %s3553_s27, %s3553_s27 }
  0x69   : > { %p3150_p5 = scmp.ne.s32.totalorder %s3553_s27, %s3149_s25  ;;  %p3158_p11 = scmp.lt.s32.totalorder %s3149_s25, %s3149_s25 }
  0x6b   : > { %p3152_p7 = pnand %p3150_p5, %p3563_p8  ;;  %p3159_p12 = por %p3158_p11, %p3157_p10 }
  0x6d   : > { %p3153_p9 = pneg %p3152_p7 }
  0x6f   : > { %p3160_p4 = pnand %p3159_p12, %p3153_p9 }
  0x71   : > { %3163 = shalt.err (!%p3160_p4)
}
  0x72   : > { %2970 = dma.hbm_to_vmem [thread:$0]  (!%p3549_p6), %s4231_s8, 32, %s3553_s27, [#allocation12], %s3393_s14, %s3393_s14, %s3394_s15  }
  0x73   : > { %s3395_s19 = smov [#allocation7]   ;;  %s3396_s29 = smov [#allocation10]  }
  0x74   : > { %s511_s28 = sshll.u32 %s3395_s19, 4  ;;  %s540_s26 = sshll.u32 %s3396_s29, 4  ;;  %s512_s28 = int_to_ptr.vmem [resolvable:$true] %s511_s28  ;;  %s541_s26 = int_to_ptr.vmem [resolvable:$true] %s540_s26 }
  0x75   : > { %s4232_s22 = sld [smem:[#allocation26_spill]] }
  0x7b   : > { %s3164_s25 = scalar_lea.hbm %s4232_s22, 16 }
  0x7c   : > { %p3165_p13 = scmp.ne.s32.totalorder %s4232_s22, %s3164_s25  ;;  %p3171_p5 = scmp.lt.u32.totalorder %s3164_s25, %s4232_s22 }
  0x7e   : > { %p3167_p0 = pnand %p3165_p13, %p3563_p8 }
  0x80   : > { %p3168_p2 = pneg %p3167_p0 }
  0x82   : > { %p3173_p7 = pnand %p3171_p5, %p3168_p2 }
  0x84   : > { %3176 = shalt.err (!%p3173_p7)
}
  0x85   : > { %s3177_s27 = scalar_lea.vmem %s512_s28, 16  ;;  %s3184_s16 = scalar_lea.vmem %s512_s28, 32 }
  0x86   : > { %p3178_p9 = scmp.ne.s32.totalorder %s512_s28, %s3177_s27  ;;  %p3185_p12 = scmp.lt.s32.totalorder %s512_s28, %s512_s28 }
  0x87   : > { %p3186_p4 = scmp.lt.s32.totalorder %s3184_s16, %s3177_s27 }
  0x88   : > { %p3180_p10 = pnand %p3178_p9, %p3563_p8 }
  0x89   : > { %p3187_p1 = por %p3186_p4, %p3185_p12 }
  0x8a   : > { %p3181_p11 = pneg %p3180_p10 }
  0x8c   : > { %p3188_p3 = pnand %p3187_p1, %p3181_p11 }
  0x8e   : > { %3191 = shalt.err (!%p3188_p3)
}
  0x8f   : > { %2961 = dma.hbm_to_vmem [thread:$0]  (!%p3549_p6), %s4232_s22, 16, %s512_s28, [#allocation6]  }
  0x90   : > { %s4233_s7 = sld [smem:[#allocation30_spill]] }
  0x96   : > { %s3192_s29 = scalar_lea.hbm %s4233_s7, 32 }
  0x97   : > { %p3193_p13 = scmp.ne.s32.totalorder %s4233_s7, %s3192_s29  ;;  %p3199_p3 = scmp.lt.u32.totalorder %s3192_s29, %s4233_s7 }
  0x99   : > { %p3195_p0 = pnand %p3193_p13, %p3563_p8 }
  0x9b   : > { %p3196_p1 = pneg %p3195_p0 }
  0x9d   : > { %p3201_p2 = pnand %p3199_p3, %p3196_p1 }
  0x9f   : > { %3204 = shalt.err (!%p3201_p2)
}
  0xa0   : > { %s3205_s27 = scalar_lea.vmem %s541_s26, 32  ;;  %p3213_p10 = scmp.lt.s32.totalorder %s541_s26, %s541_s26 }
  0xa1   : > { %p3206_p5 = scmp.ne.s32.totalorder %s541_s26, %s3205_s27  ;;  %p3214_p11 = scmp.lt.s32.totalorder %s3205_s27, %s3205_s27 }
  0xa3   : > { %p3208_p7 = pnand %p3206_p5, %p3563_p8  ;;  %p3215_p12 = por %p3214_p11, %p3213_p10 }
  0xa5   : > { %p3209_p9 = pneg %p3208_p7 }
  0xa7   : > { %p3216_p4 = pnand %p3215_p12, %p3209_p9 }
  0xa9   : > { %3219 = shalt.err (!%p3216_p4)
}
  0xaa   : > { %2967 = dma.hbm_to_vmem [thread:$0]  (!%p3549_p6), %s4233_s7, 32, %s541_s26, [#allocation9], %s3393_s14, %s3393_s14, %s3394_s15  }
  0xab   : > { %s3397_s5 = smov [#allocation13]   ;;  %s3220_s29 = scalar_lea.hbm %s4177_s9, 32 }
  0xac   : > { %s566_s13 = sshll.u32 %s3397_s5, 4  ;;  %p3221_p13 = scmp.ne.s32.totalorder %s4177_s9, %s3220_s29  ;;  %s567_s13 = int_to_ptr.vmem [resolvable:$true] %s566_s13 }
  0xad   : > { %p3227_p3 = scmp.lt.u32.totalorder %s3220_s29, %s4177_s9 }
  0xae   : > { %p3223_p0 = pnand %p3221_p13, %p3563_p8 }
  0xb0   : > { %p3224_p1 = pneg %p3223_p0 }
  0xb2   : > { %p3229_p2 = pnand %p3227_p3, %p3224_p1 }
  0xb4   : > { %3232 = shalt.err (!%p3229_p2)
}
  0xb5   : > { %s3233_s26 = scalar_lea.vmem %s567_s13, 32  ;;  %p3241_p10 = scmp.lt.s32.totalorder %s567_s13, %s567_s13 }
  0xb6   : > { %p3234_p5 = scmp.ne.s32.totalorder %s567_s13, %s3233_s26  ;;  %p3242_p11 = scmp.lt.s32.totalorder %s3233_s26, %s3233_s26 }
  0xb8   : > { %p3236_p7 = pnand %p3234_p5, %p3563_p8  ;;  %p3243_p12 = por %p3242_p11, %p3241_p10 }
  0xba   : > { %p3237_p9 = pneg %p3236_p7 }
  0xbc   : > { %p3244_p4 = pnand %p3243_p12, %p3237_p9 }
  0xbe   : > { %3247 = shalt.err (!%p3244_p4)
}
  0xbf   : > { %2973 = dma.hbm_to_vmem [thread:$0]  (!%p3549_p6), %s4177_s9, 32, %s567_s13, [#allocation12], %s3393_s14, %s3393_s14, %s3394_s15  }
  0xc0   : > { %s2546_s3 = sadd.s32 4294967294, %s3388_s21   ;;  %s3699_s24 = sadd.s32 1, %s3388_s21  }
  0xc1   : > { %s46_s16 = ssub.s32 %s3388_s21, %s3699_s24  ;;  %s49_s5 = sadd.s32 1, %s3384_s20 }
  0xc2   : > { %p47_p8 = scmp.eq.s32.totalorder %s46_s16, 0  ;;  %p56_p13 = scmp.ne.s32.totalorder %s3384_s20, %s3380_s30 }
  0xc3   : > { %p57_p0 = scmp.eq.s32.totalorder %s3388_s21, 0  ;;  %p62_p1 = scmp.ne.s32.totalorder %s3380_s30, %s3376_s0 }
  0xc4   : > { %s3710_s11 = scalar_select %p47_p8, %s3384_s20, %s49_s5  }
  0xc5   : > { %p3712_p3 = por %p57_p0, %p56_p13  ;;  %p4235_p2 = scmp.eq.s32.totalorder %s3531_s2, 0 }
  0xc6   : > { %p448_p5 = scmp.eq.s32.totalorder %s3531_s2, 1  ;;  %p454_p7 = scmp.eq.s32.totalorder %s2546_s3, 1 }
  0xc7   : > { %p3718_p6 = por %p4235_p2, %p62_p1  ;;  %p2991_p9 = scmp.lt.s32.totalorder %s3388_s21, 2 }
  0xc8   : > { %s604_s15 = sand.u32 1, %s3384_s20   ;;  %p3725_p10 = por %p448_p5, %p56_p13 }
  0xc9   : > { %p3729_p11 = por %p454_p7, %p62_p1  ;;  %s2555_s17 = sshll.u32 %s604_s15, 3 }
  0xca   : > { %s4237_s13 = scalar_select %p3725_p10, 1, 0 }
  0xcb   : > { %s4238_s29 = scalar_select %p3729_p11, 1, 0 }
  0xcc   : > { %s2556_s18 = sshll.u32 %s3388_s21, 7  ;;  %s4239_s26 = sld [smem:[#allocation23_spill]] }
  0xcd   : > { %s608_s28 = scalar_lea.vmem [#allocation2], %s2555_s17  ;;  %p3743_p12 = pnand %p2991_p9, %p3712_p3 }
  0xce   : > { %s615_s3 = sshll.u32 %s608_s28, 4  ;;  %s605_s5 = scalar_lea.sflag [#allocation3], %s604_s15  ;;  %s3739_s3 = int_to_ptr.vmem [resolvable:$true] %s615_s3 }
  0xcf   : > { %p3250_p8 = pneg %p3743_p12 }
  0xd2   : > { %s3737_s27 = scalar_lea.hbm %s4239_s26, %s2556_s18  ;;  %s3253_s25 = scalar_lea.hbm %s4239_s26, 256 }
  0xd3   : > { %s3248_s7 = scalar_lea.hbm %s3737_s27, 128  ;;  %p3254_p1 = scmp.lt.u32.totalorder %s3737_s27, %s4239_s26 }
  0xd4   : > { %p3249_p4 = scmp.ne.s32.totalorder %s3737_s27, %s3248_s7  ;;  %p3255_p3 = scmp.lt.u32.totalorder %s3253_s25, %s3248_s7 }
  0xd5   : > { %p3257_p5 = scmp.lt.u32.totalorder %s3248_s7, %s3737_s27 }
  0xd6   : > { %p3251_p13 = pnand %p3250_p8, %p3249_p4  ;;  %p3256_p2 = por %p3255_p3, %p3254_p1 }
  0xd8   : > { %p3252_p0 = pneg %p3251_p13  ;;  %p3258_p7 = por %p3257_p5, %p3256_p2 }
  0xda   : > { %p3259_p9 = pnand %p3258_p7, %p3252_p0 }
  0xdc   : > { %3262 = shalt.err (!%p3259_p9)
}
  0xdd   : > { %s3263_s15 = scalar_lea.vmem %s3739_s3, 128  ;;  %s3398_s28 = smov [#allocation2]  }
  0xde   : > { %p3264_p4 = scmp.ne.s32.totalorder %s3739_s3, %s3263_s15  ;;  %s3268_s17 = sshll.u32 %s3398_s28, 4  ;;  %s3269_s17 = int_to_ptr.vmem [resolvable:$false] %s3268_s17 }
  0xdf   : > { %s3270_s18 = scalar_lea.vmem %s3269_s17, 256  ;;  %p3271_p10 = scmp.lt.s32.totalorder %s3739_s3, %s3269_s17 }
  0xe0   : > { %p3266_p13 = pnand %p3264_p4, %p3250_p8  ;;  %p3272_p1 = scmp.lt.s32.totalorder %s3270_s18, %s3263_s15 }
  0xe2   : > { %p3267_p11 = pneg %p3266_p13  ;;  %p3273_p3 = por %p3272_p1, %p3271_p10 }
  0xe4   : > { %p3274_p2 = pnand %p3273_p3, %p3267_p11 }
  0xe6   : > { %3277 = shalt.err (!%p3274_p2)
}
  0xe7   : > { %2977 = dma.hbm_to_vmem [thread:$0]  (!%p3743_p12), %s3737_s27, 128, %s3739_s3, %s605_s5  }
  0xe8   : > { %p4241_p0 = scmp.ne.s32.totalorder %s4226_s23, 0 }
  0xe9   : > { %s3775_s7 = sand.u32 (!%p4241_p0), 1, %s3380_s30  }
  0xea   : > { %630 = sbr.rel (%p4241_p0) target bundleno = 6311 (0x18a7), region = 92  ;;  %s4202_s25 = sshll.u32 (!%p4241_p0), %s3775_s7, 3 }
  0xeb   : > { %s633_s19 = scalar_lea.sflag (!%p4241_p0), [#allocation3], %s3775_s7  ;;  %s636_s1 = scalar_lea.vmem (!%p4241_p0), [#allocation2], %s4202_s25 }
  0xf1   : > { %3351 = dma.done.wait (%p3718_p6), %s633_s19, 128  }
  0xf2   : > { %3353 = vsyncadd (%p3718_p6), %s633_s19, 4294967168  ;;  %p4242_p10 = scmp.eq.s32.totalorder %s3531_s2, 0 }
  0xf4   : > { %3355 = dma.done.wait (%p4242_p10), [#allocation6], 32   ;;  %p4243_p11 = pmov %p4242_p10 }
  0xf5   : > { %p4244_p12 = pmov %p4242_p10 }
  0xf6   : > { %3357 = vsyncadd (%p4243_p11), [#allocation6], 4294967264 }
  0xf7   : > { %3359 = dma.done.wait (%p4244_p12), [#allocation9], 64   ;;  %p4245_p8 = pmov %p4242_p10 }
  0xf9   : > { %3361 = vsyncadd (%p4245_p8), [#allocation9], 4294967232  ;;  %p4246_p5 = pmov %p4245_p8 }
  0xfb   : > { %3363 = dma.done.wait (%p4246_p5), [#allocation12], 64   ;;  %p4247_p7 = pmov %p4246_p5 }
  0xfc   : > { %vm728_vm0 = vcmask 261120   ;;  %v725_v0 = vld [vmem:[%s636_s1] sm:$0xff]  ;;  %s4248_s4 = sld [smem:[#allocation27_spill]]  ;;  %v3399_v10 = vmov 0.0|0.0   ;;  %vm3400_vm1 = vmmov 0   ;;  %v3401_v13 = vmov 0.0  }
  0xfd   : > { %3365 = vsyncadd (%p4247_p7), [#allocation12], 4294967232  ;;  %v729_v1 = vsel %vm728_vm0, %v725_v0, 0.0  ;;  %2859 = vmatprep.subr.bf16.mxu0 %v3399_v10  ;;  %2712 = vmatprep.mubr.msk.f32.mxu0 %vm3400_vm1, %v3401_v13  ;;  %v2566_v19 = vld [vmem:[#allocation5] ss:$0 sm:$0xff]  ;;  %s4204_s17 = smov 64  }
  0xfe   : > { %730 = vadd.xlane.f32.xlu0 %v729_v1  ;;  %2715 = vmatprep.subr.mxu1 %v3401_v13  ;;  %v2567_v21 = vld [vmem:[#allocation7] ss:$0 sm:$0xff]  ;;  %v2568_v24 = vld [vmem:[#allocation8] ss:$0 sm:$0xff]  ;;  %s3403_s18 = smov 96   ;;  %s3404_s19 = smov 80  }
  0xff   : > { %2717 = vmatprep.mubr.msk.f32.mxu1 %vm3400_vm1, %v3401_v13  ;;  %vm852_vm2 = vcmask 130048   ;;  %p722_p6 = scmp.lt.s32.totalorder %s3531_s2, 1  ;;  %s4249_s27 = sld [smem:[#allocation24_spill]]  ;;  %vm928_vm3 = vcmask 64512   ;;  %vm1408_vm4 = vcmask 523264  }
 0x100   : > { %s3405_s16 = smov 112   ;;  %s4205_s5 = smov 48  }
 0x101   : > { %s723_s1 = scalar_select %p722_p6, %s3531_s2, 1 }
 0x102   : > { %v758_v7 = vld [vmem:[%s4248_s4] sm:$0xff]  ;;  %v759_v8 = vld [vmem:[%s4248_s4 + $0x8] sm:$0xff]  ;;  %v760_v9 = vld [vmem:[%s4248_s4 + $0x10] sm:$0xff]  ;;  %s4250_s6 = sld [smem:[#allocation29_spill]]  ;;  %s4203_s15 = smov 16  }
 0x103   : > { %v2860_v11 = vpack.c.bf16 %v759_v8, %v758_v7  ;;  %v761_v12 = vld [vmem:[%s4248_s4 + $0x18] sm:$0xff]  ;;  %v2577_v7 = vld [vmem:[#allocation10] ss:$0 sm:$0xff]  ;;  %s4258_s23 = sld [smem:[#allocation36_spill]]  ;;  %p4261_p4 = scmp.ne.s32.totalorder %s4237_s13, 0 }
 0x104   : > { %v2863_v14 = vpack.c.bf16 %v761_v12, %v760_v9  ;;  %s3408_s14 = smov [#allocation14]  }
 0x105   : > { %2861 = vmatpush3.bf16.msra.mxu0 %v2860_v11  ;;  %s724_s3 = scalar_lea.vmem %s4249_s27, %s723_s1  ;;  %s4252_s1 = sld [smem:[#allocation33_spill]] }
 0x106   : > { %2862 = vmatprep.subr.bf16.mxu0 %v3399_v10  ;;  %v3839_v31 = vld [vmem:[%s724_s3] ss:$0 sm:$0xff]  ;;  %s4253_s27 = sld [smem:[#allocation34_spill]]  ;;  %s4259_s3 = sshll.u32 %s3775_s7, 3 }
 0x108   : > { %v1186_v61 = vld [vmem:[%s4250_s6] sm:$0xff]  ;;  %v1187_v62 = vld [vmem:[%s4250_s6 + $0x8] sm:$0xff]  ;;  %v1188_v63 = vld [vmem:[%s4250_s6 + $0x10] sm:$0xff] }
 0x109   : > { %2864 = vmatpush3.bf16.msra.mxu0 %v2863_v14  ;;  %v1189_v1 = vld [vmem:[%s4250_s6 + $0x18] sm:$0xff] }
 0x10a   : > { %2865 = vmatprep.subr.bf16.mxu0 %v3399_v10 }
 0x18b   : > { %v731_v2 = vpop.xlane.xlu0 %730 }
 0x18c   : > { %v733_v3 = vmul.f32 0.03125, %v731_v2  ;;  %v2869_v2 = vpack.c.bf16 %v1189_v1, %v1188_v63 }
 0x18e   : > { %v734_v4 = vsub.f32 %v725_v0, %v733_v3  ;;  %v2866_v0 = vpack.c.bf16 %v1187_v62, %v1186_v61  ;;  %v2583_v61 = vld [vmem:[%s4252_s1] ss:$0 sm:$0xff] }
 0x190   : > { %v735_v5 = vmul.f32 %v734_v4, %v734_v4 }
 0x192   : > { %v736_v6 = vsel %vm728_vm0, %v735_v5, 0.0 }
 0x193   : > { %737 = vadd.xlane.f32.xlu0 %v736_v6 }
 0x220   : > { %v738_v15 = vpop.xlane.xlu0 %737 }
 0x221   : > { %v739_v16 = vmul.f32 0.03125, %v738_v15 }
 0x223   : > { %v740_v17 = vadd.f32 1e-12, %v739_v16 }
 0x225   : > { %3048 = vrsqrt.f32 %v740_v17 }
 0x22f   : > { %v3049_v18 = vpop.eup %3048 }
 0x230   : > { %v742_v20 = vmul.f32 %v3049_v18, %v734_v4 }
 0x232   : > { %v749_v22 = vmul.f32 %v2566_v19, %v742_v20  ;;  %v1300_v20 = vld [vmem:[%s4178_s10] sm:$0xff] }
 0x234   : > { %v3819_v23 = vadd.f32 %v2567_v21, %v749_v22  ;;  %v1301_v21 = vld [vmem:[%s4178_s10 + $0x8] sm:$0xff] }
 0x235   : > { %v2872_v22 = vpack.c.bf16 %v1301_v21, %v1300_v20  ;;  %v2585_v20 = vld [vmem:[%s4253_s27] ss:$0 sm:$0xff] }
 0x236   : > { %2713 = vmatmul.mubr.msk.f32.vlgmr.msra.gmra.mrb[0].mxu0 %vm728_vm0, %v3819_v23 }
 0x237   : > { %2743 = vmatprep.mubr.msk.f32.mxu0 %vm3400_vm1, %v3401_v13  ;;  %2867 = vmatpush3.bf16.msra.mxu0 %v2866_v0 }
 0x238   : > { %2868 = vmatprep.subr.bf16.mxu0 %v3399_v10 }
 0x23b   : > { %2870 = vmatpush3.bf16.msra.mxu0 %v2869_v2 }
 0x23c   : > { %2877 = vmatprep.subr.bf16.mxu0 %v3399_v10 }
 0x309   : > { %v838_v25 = vpop.f32.mrb[0].mxu0 }
 0x30a   : > { %v839_v26 = vadd.f32 %v2568_v24, %v838_v25  ;;  %v2714_v27 = vpop.f32.mrb[1].mxu0  ;;  %v1303_v24 = vld [vmem:[%s4178_s10 + $0x18] sm:$0xff] }
 0x30c   : > { %940 = vrot.lane.b32.xlu0 %v839_v26, %s4204_s17  ;;  %850 = vrot.lane.b32.xlu1 %v839_v26, %s3403_s18  ;;  %v842_v29 = vmul.f32 0.25, %v839_v26  ;;  %s3282_s17 = sshll.u32 %s3408_s14, 4  ;;  %s3283_s17 = int_to_ptr.vmem [resolvable:$false] %s3282_s17 }
 0x310   : > { %1018 = vrot.lane.b32.xlu0 %v839_v26, %s3404_s19 }
 0x37e   : > { %v851_v28 = vpop.permute.xlu1 %850  ;;  %v941_v30 = vpop.permute.xlu0 %940 }
 0x37f   : > { %2716 = vmatpush3.xpose.msk.msra.mxu1 %vm852_vm2, %v851_v28 }
 0x380   : > { %2720 = vmatprep.subr.mxu1 %v3401_v13 }
 0x382   : > { %2718 = vmatmul.mubr.msk.f32.vlgmr.msra.gmra.mrb[0].mxu1 %vm852_vm2, %v842_v29  ;;  %v1019_v41 = vpop.permute.xlu0 %1018 }
 0x383   : > { %2721 = vmatpush3.msra.mxu1 %v941_v30  ;;  %2722 = vmatprep.mubr.msk.f32.mxu1 %vm3400_vm1, %v3401_v13  ;;  %v2579_v30 = vld [vmem:[#allocation11] ss:$0 sm:$0xff] }
 0x384   : > { %2725 = vmatprep.subr.mxu1 %v3401_v13 }
 0x455   : > { %v924_v32 = vpop.f32.mrb[0].mxu1 }
 0x456   : > { %v925_v33 = vadd.f32 %v3839_v31, %v924_v32  ;;  %v2719_v34 = vpop.f32.mrb[1].mxu1 }
 0x458   : > { %v929_v35 = vsel %vm928_vm3, %v925_v33, -inf }
 0x459   : > { %930 = vmax.xlane.f32.xlu1 %v929_v35 }
 0x4e6   : > { %v931_v36 = vpop.xlane.xlu1 %930 }
 0x4e7   : > { %v932_v37 = vsub.f32 %v925_v33, %v931_v36  ;;  %v2580_v33 = vld [vmem:[#allocation13] ss:$0 sm:$0xff]  ;;  %v1393_v36 = vld [vmem:[%s4180_s12] sm:$0xff] }
 0x4e9   : > { %v933_v38 = vmul.f32 1.442695, %v932_v37  ;;  %v1394_v37 = vld [vmem:[%s4180_s12 + $0x8] sm:$0xff] }
 0x4eb   : > { %3050 = vpow2.f32 %v933_v38  ;;  %v2878_v38 = vpack.c.bf16 %v1394_v37, %v1393_v36 }
 0x4f5   : > { %v3051_v39 = vpop.eup %3050 }
 0x4f6   : > { %v935_v40 = vsel %vm928_vm3, %v3051_v39, 0.0 }
 0x4f7   : > { %936 = vadd.xlane.f32.xlu0 %v935_v40  ;;  %v1396_v40 = vld [vmem:[%s4180_s12 + $0x18] sm:$0xff] }
 0x50d   : > { %1016 = vrot.lane.b32.xlu0 %v842_v29, %s3405_s16 }
 0x584   : > { %v937_v42 = vpop.xlane.xlu0 %936 }
 0x585   : > { %3052 = vrcp.f32 %v937_v42  ;;  %v1397_v42 = vld [vmem:[%s4180_s12 + $0x20] sm:$0xff] }
 0x588   : > { %v1017_v45 = vpop.permute.xlu0 %1016 }
 0x58f   : > { %v3053_v43 = vpop.eup %3052 }
 0x590   : > { %v939_v44 = vmul.f32 %v3053_v43, %v3051_v39  ;;  %v1395_v39 = vld [vmem:[%s4180_s12 + $0x10] sm:$0xff]  ;;  %v1398_v43 = vld [vmem:[%s4180_s12 + $0x28] sm:$0xff] }
 0x592   : > { %2723 = vmatmul.mubr.msk.f32.vlgmr.msra.gmra.mrb[2].mxu1 %vm928_vm3, %v939_v44  ;;  %v2884_v44 = vpack.c.bf16 %v1398_v43, %v1397_v42 }
 0x593   : > { %2726 = vmatpush3.xpose.msk.msra.mxu1 %vm852_vm2, %v1019_v41  ;;  %2727 = vmatprep.mubr.msk.f32.mxu1 %vm3400_vm1, %v3401_v13  ;;  %v2881_v41 = vpack.c.bf16 %v1396_v40, %v1395_v39 }
 0x594   : > { %2730 = vmatprep.subr.mxu1 %v3401_v13 }
 0x596   : > { %2728 = vmatmul.mubr.msk.f32.vlgmr.msra.gmra.mrb[4].mxu1 %vm852_vm2, %v1017_v45  ;;  %v1399_v45 = vld [vmem:[%s4180_s12 + $0x30] sm:$0xff] }
 0x597   : > { %2732 = vmatprep.mubr.msk.f32.mxu1 %vm3400_vm1, %v3401_v13 }
 0x665   : > { %v1012_v46 = vpop.f32.mrb[2].mxu1 }
 0x666   : > { %v2724_v47 = vpop.f32.mrb[3].mxu1 }
 0x669   : > { %v1090_v48 = vpop.f32.mrb[4].mxu1 }
 0x66a   : > { %v1091_v49 = vadd.f32 %v3839_v31, %v1090_v48  ;;  %v2729_v50 = vpop.f32.mrb[5].mxu1 }
 0x66c   : > { %v1094_v51 = vsel %vm928_vm3, %v1091_v49, -inf }
 0x66d   : > { %1095 = vmax.xlane.f32.xlu1 %v1094_v51 }
 0x67e   : > { %1105 = vrot.lane.b32.xlu1 %v839_v26, %s4205_s5  ;;  %s4254_s5 = sld [smem:[#allocation35_spill]] }
 0x6fa   : > { %v1096_v52 = vpop.xlane.xlu1 %1095 }
 0x6fb   : > { %v1097_v53 = vsub.f32 %v1091_v49, %v1096_v52 }
 0x6fd   : > { %v1098_v54 = vmul.f32 1.442695, %v1097_v53 }
 0x6fe   : > { %v1106_v55 = vpop.permute.xlu1 %1105 }
 0x6ff   : > { %3054 = vpow2.f32 %v1098_v54  ;;  %2731 = vmatpush3.msra.mxu1 %v1106_v55 }
 0x700   : > { %2871 = vmatprep.subr.bf16.mxu1 %v3399_v10 }
 0x709   : > { %v3055_v56 = vpop.eup %3054 }
 0x70a   : > { %v1100_v57 = vsel %vm928_vm3, %v3055_v56, 0.0 }
 0x70b   : > { %1101 = vadd.xlane.f32.xlu0 %v1100_v57 }
 0x798   : > { %v1102_v58 = vpop.xlane.xlu0 %1101 }
 0x799   : > { %3056 = vrcp.f32 %v1102_v58 }
 0x7a3   : > { %v3057_v59 = vpop.eup %3056 }
 0x7a4   : > { %v1104_v60 = vmul.f32 %v3057_v59, %v3055_v56 }
 0x7a6   : > { %2733 = vmatmul.mubr.msk.f32.vlgmr.msra.gmra.mrb[6].mxu1 %vm928_vm3, %v1104_v60 }
 0x7a7   : > { %2754 = vmatprep.mubr.msk.f32.mxu1 %vm3400_vm1, %v3401_v13  ;;  %2873 = vmatpush3.bf16.msra.mxu1 %v2872_v22  ;;  %v2586_v22 = vld [vmem:[%s4254_s5] ss:$0 sm:$0xff] }
 0x7a8   : > { %2874 = vmatprep.subr.bf16.mxu1 %v3399_v10 }
 0x879   : > { %v1177_v3 = vpop.f32.mrb[6].mxu1 }
 0x87a   : > { %1182 = vrot.lane.b32.xlu1 %v1177_v3, %s4203_s15  ;;  %v2734_v4 = vpop.f32.mrb[7].mxu1  ;;  %s4251_s15 = sld [smem:[#allocation32_spill]] }
 0x880   : > { %v2581_v48 = vld [vmem:[%s4251_s15] ss:$0 sm:$0xff] }
 0x8ec   : > { %v1183_v5 = vpop.permute.xlu1 %1182 }
 0x8ed   : > { %v1185_v6 = vsel %vm852_vm2, %v1012_v46, %v1183_v5  ;;  %v1400_v46 = vld [vmem:[%s4180_s12 + $0x38] sm:$0xff] }
 0x8ee   : > { %2744 = vmatmul.mubr.msk.f32.vlgmr.msra.gmra.mrb[2].mxu0 %vm728_vm0, %v1185_v6  ;;  %v2887_v47 = vpack.c.bf16 %v1400_v46, %v1399_v45 }
 0x8ef   : > { %2773 = vmatprep.mubr.msk.f32.mxu0 %vm3400_vm1, %v3401_v13  ;;  %2879 = vmatpush3.bf16.msra.mxu0 %v2878_v38 }
 0x8f0   : > { %2880 = vmatprep.subr.bf16.mxu0 %v3399_v10 }
 0x8f3   : > { %2882 = vmatpush3.bf16.msra.mxu0 %v2881_v41 }
 0x8f4   : > { %2883 = vmatprep.subr.bf16.mxu0 %v3399_v10 }
 0x8f7   : > { %2885 = vmatpush3.bf16.msra.mxu0 %v2884_v44 }
 0x8f8   : > { %2886 = vmatprep.subr.bf16.mxu0 %v3399_v10 }
 0x8fb   : > { %2888 = vmatpush3.bf16.msra.mxu0 %v2887_v47 }
 0x8fc   : > { %2797 = vmatprep.subr.mxu0 %v3401_v13 }
 0x9c1   : > { %v1266_v8 = vpop.f32.mrb[2].mxu0 }
 0x9c2   : > { %v1267_v9 = vadd.f32 %v2577_v7, %v1266_v8  ;;  %v2745_v11 = vpop.f32.mrb[3].mxu0  ;;  %v2587_v8 = vld [vmem:[%s4248_s4 + $0x20] sm:$0xff] }
 0x9c4   : > { %v1270_v12 = vadd.f32 %v1267_v9, %v3819_v23  ;;  %v1302_v23 = vld [vmem:[%s4178_s10 + $0x10] sm:$0xff]  ;;  %v2588_v9 = vld [vmem:[%s4248_s4 + $0x28] sm:$0xff] }
 0x9c5   : > { %v2875_v25 = vpack.c.bf16 %v1303_v24, %v1302_v23  ;;  %v2890_v11 = vpack.c.bf16 %v2588_v9, %v2587_v8 }
 0x9c6   : > { %v1273_v14 = vsel %vm728_vm0, %v1270_v12, 0.0 }
 0x9c7   : > { %1274 = vadd.xlane.f32.xlu1 %v1273_v14  ;;  %2876 = vmatpush3.bf16.msra.mxu1 %v2875_v25  ;;  %v2590_v14 = vld [vmem:[%s4248_s4 + $0x38] sm:$0xff]  ;;  %v2591_v25 = vld [vmem:[#allocation8 + $0x1] ss:$0 sm:$0xff] }
 0x9c8   : > { %2889 = vmatprep.subr.bf16.mxu1 %v3399_v10 }
 0xa54   : > { %v1275_v15 = vpop.xlane.xlu1 %1274 }
 0xa55   : > { %v1276_v16 = vmul.f32 0.03125, %v1275_v15 }
 0xa57   : > { %v1277_v17 = vsub.f32 %v1270_v12, %v1276_v16  ;;  %v2589_v12 = vld [vmem:[%s4248_s4 + $0x30] sm:$0xff]  ;;  %s4260_s4 = sld [smem:[#allocation38_spill]] }
 0xa58   : > { %v2893_v15 = vpack.c.bf16 %v2590_v14, %v2589_v12 }
 0xa59   : > { %v1278_v18 = vmul.f32 %v1277_v17, %v1277_v17 }
 0xa5b   : > { %v1279_v19 = vsel %vm728_vm0, %v1278_v18, 0.0 }
 0xa5c   : > { %1280 = vadd.xlane.f32.xlu0 %v1279_v19 }
 0xae9   : > { %v1281_v26 = vpop.xlane.xlu0 %1280 }
 0xaea   : > { %v1282_v27 = vmul.f32 0.03125, %v1281_v26 }
 0xaec   : > { %v1283_v28 = vadd.f32 1e-12, %v1282_v27 }
 0xaee   : > { %3058 = vrsqrt.f32 %v1283_v28 }
 0xaf8   : > { %v3059_v29 = vpop.eup %3058 }
 0xaf9   : > { %v1285_v32 = vmul.f32 %v3059_v29, %v1277_v17 }
 0xafb   : > { %v1292_v34 = vmul.f32 %v2579_v30, %v1285_v32 }
 0xafd   : > { %v1299_v35 = vadd.f32 %v2580_v33, %v1292_v34 }
 0xaff   : > { %2755 = vmatmul.mubr.msk.f32.vlgmr.msra.gmra.mrb[8].mxu1 %vm728_vm0, %v1299_v35 }
 0xb00   : > { %2784 = vmatprep.mubr.msk.f32.mxu1 %vm3400_vm1, %v3401_v13  ;;  %2891 = vmatpush3.bf16.msra.mxu1 %v2890_v11 }
 0xb01   : > { %2892 = vmatprep.subr.bf16.mxu1 %v3399_v10 }
 0xb04   : > { %2894 = vmatpush3.bf16.msra.mxu1 %v2893_v15 }
 0xb05   : > { %2787 = vmatprep.subr.mxu1 %v3401_v13 }
 0xbd2   : > { %v1380_v49 = vpop.f32.mrb[8].mxu1 }
 0xbd3   : > { %v1381_v50 = vadd.f32 %v2581_v48, %v1380_v49  ;;  %v2756_v51 = vpop.f32.mrb[9].mxu1 }
 0xbd5   : > { %v1385_v52 = vmul.f32 0.044715, %v1381_v50  ;;  %v1384_v58 = vmul.f32 0.5, %v1381_v50 }
 0xbd7   : > { %v1386_v53 = vmul.f32 %v1385_v52, %v1381_v50 }
 0xbd9   : > { %v1387_v54 = vmul.f32 %v1386_v53, %v1381_v50 }
 0xbdb   : > { %v1388_v55 = vadd.f32 %v1387_v54, %v1381_v50 }
 0xbdd   : > { %v1389_v56 = vmul.f32 0.7978846, %v1388_v55 }
 0xbdf   : > { %3060 = vtanh.f32 %v1389_v56 }
 0xbe9   : > { %v3061_v57 = vpop.eup %3060 }
 0xbea   : > { %v1391_v59 = vadd.f32 1.0, %v3061_v57 }
 0xbec   : > { %v1392_v60 = vmul.f32 %v1391_v59, %v1384_v58  ;;  %v2599_v59 = vld [vmem:[%s4250_s6 + $0x20] sm:$0xff] }
 0xbee   : > { %2774 = vmatmul.mubr.msk.f32.vlgmr.msra.gmra.mrb[4].mxu0 %vm1408_vm4, %v1392_v60  ;;  %v2600_v60 = vld [vmem:[%s4250_s6 + $0x28] sm:$0xff] }
 0xbef   : > { %2799 = vmatprep.mubr.msk.f32.mxu0 %vm3400_vm1, %v3401_v13 }
 0xcc1   : > { %v1478_v62 = vpop.f32.mrb[4].mxu0 }
 0xcc2   : > { %v1479_v63 = vadd.f32 %v2583_v61, %v1478_v62  ;;  %v2775_v0 = vpop.f32.mrb[5].mxu0  ;;  %v2601_v61 = vld [vmem:[%s4250_s6 + $0x30] sm:$0xff]  ;;  %v2896_v62 = vpack.c.bf16 %v2600_v60, %v2599_v59  ;;  %v2623_v59 = vld [vmem:[%s4252_s1 + $0x1] ss:$0 sm:$0xff] }
 0xcc4   : > { %v1482_v1 = vadd.f32 %v1479_v63, %v1299_v35  ;;  %v2602_v63 = vld [vmem:[%s4250_s6 + $0x38] sm:$0xff]  ;;  %s2352_s6 = scalar_lea.sflag [#allocation4], %s3775_s7 }
 0xcc5   : > { %v2899_v0 = vpack.c.bf16 %v2602_v63, %v2601_v61 }
 0xcc6   : > { %v1485_v2 = vsel %vm728_vm0, %v1482_v1, 0.0 }
 0xcc7   : > { %1486 = vadd.xlane.f32.xlu0 %v1485_v2 }
 0xd54   : > { %v1487_v3 = vpop.xlane.xlu0 %1486 }
 0xd55   : > { %v1488_v4 = vmul.f32 0.03125, %v1487_v3 }
 0xd57   : > { %v1489_v5 = vsub.f32 %v1482_v1, %v1488_v4 }
 0xd59   : > { %v1490_v6 = vmul.f32 %v1489_v5, %v1489_v5 }
 0xd5b   : > { %v1491_v7 = vsel %vm728_vm0, %v1490_v6, 0.0 }
 0xd5c   : > { %1492 = vadd.xlane.f32.xlu0 %v1491_v7  ;;  %v2603_v7 = vld [vmem:[#allocation10 + $0x1] ss:$0 sm:$0xff] }
 0xde9   : > { %v1493_v16 = vpop.xlane.xlu0 %1492 }
 0xdea   : > { %v1494_v17 = vmul.f32 0.03125, %v1493_v16 }
 0xdec   : > { %v1495_v18 = vadd.f32 1e-12, %v1494_v17 }
 0xdee   : > { %3062 = vrsqrt.f32 %v1495_v18 }
 0xdf8   : > { %v3063_v19 = vpop.eup %3062 }
 0xdf9   : > { %v1497_v21 = vmul.f32 %v3063_v19, %v1489_v5 }
 0xdfb   : > { %v1504_v23 = vmul.f32 %v2585_v20, %v1497_v21  ;;  %v2607_v20 = vld [vmem:[%s4178_s10 + $0x20] sm:$0xff]  ;;  %v2608_v21 = vld [vmem:[%s4178_s10 + $0x28] sm:$0xff] }
 0xdfd   : > { %v3959_v24 = vadd.f32 %v2586_v22, %v1504_v23  ;;  %v2902_v22 = vpack.c.bf16 %v2608_v21, %v2607_v20  ;;  %v2609_v23 = vld [vmem:[%s4178_s10 + $0x30] sm:$0xff] }
 0xdff   : > { %2785 = vmatmul.mubr.msk.f32.vlgmr.msra.gmra.mrb[10].mxu1 %vm728_vm0, %v3959_v24 }
 0xe00   : > { %2789 = vmatprep.mubr.msk.f32.mxu1 %vm3400_vm1, %v3401_v13 }
 0xed2   : > { %v1594_v26 = vpop.f32.mrb[10].mxu1 }
 0xed3   : > { %v1595_v27 = vadd.f32 %v2591_v25, %v1594_v26  ;;  %v2786_v28 = vpop.f32.mrb[11].mxu1 }
 0xed5   : > { %1766 = vrot.lane.b32.xlu1 %v1595_v27, %s3404_s19  ;;  %1600 = vrot.lane.b32.xlu0 %v1595_v27, %s3403_s18  ;;  %v1598_v29 = vmul.f32 0.25, %v1595_v27  ;;  %s4255_s18 = smov 48   ;;  %s4256_s19 = smov 64  }
 0xed9   : > { %1764 = vrot.lane.b32.xlu0 %v1598_v29, %s3405_s16 }
 0xf47   : > { %v1767_v30 = vpop.permute.xlu1 %1766  ;;  %v1601_v32 = vpop.permute.xlu0 %1600 }
 0xf48   : > { %2788 = vmatpush3.xpose.msk.msra.mxu1 %vm852_vm2, %v1601_v32  ;;  %2798 = vmatpush3.xpose.msk.msra.mxu0 %vm852_vm2, %v1767_v30  ;;  %v2605_v30 = vld [vmem:[#allocation11 + $0x1] ss:$0 sm:$0xff] }
 0xf49   : > { %2792 = vmatprep.subr.mxu1 %v3401_v13  ;;  %2895 = vmatprep.subr.bf16.mxu0 %v3399_v10 }
 0xf4b   : > { %v1765_v33 = vpop.permute.xlu0 %1764  ;;  %2790 = vmatmul.mubr.msk.f32.vlgmr.msra.gmra.mrb[12].mxu1 %vm852_vm2, %v1598_v29 }
 0xf4c   : > { %2800 = vmatmul.mubr.msk.f32.vlgmr.msra.gmra.mrb[6].mxu0 %vm852_vm2, %v1765_v33  ;;  %2794 = vmatprep.mubr.msk.f32.mxu1 %vm3400_vm1, %v3401_v13  ;;  %v2606_v33 = vld [vmem:[#allocation13 + $0x1] ss:$0 sm:$0xff] }
 0xf4d   : > { %2815 = vmatprep.mubr.msk.f32.mxu0 %vm3400_vm1, %v3401_v13  ;;  %2897 = vmatpush3.bf16.msra.mxu0 %v2896_v62 }
 0xf4e   : > { %2898 = vmatprep.subr.bf16.mxu0 %v3399_v10 }
 0xf51   : > { %2900 = vmatpush3.bf16.msra.mxu0 %v2899_v0 }
 0xf52   : > { %2907 = vmatprep.subr.bf16.mxu0 %v3399_v10 }
0x101e   : > { %v1673_v34 = vpop.f32.mrb[12].mxu1 }
0x101f   : > { %v1674_v35 = vadd.f32 %v3839_v31, %v1673_v34  ;;  %v2791_v36 = vpop.f32.mrb[13].mxu1  ;;  %v1838_v37 = vpop.f32.mrb[6].mxu0 }
0x1020   : > { %v1839_v38 = vadd.f32 %v3839_v31, %v1838_v37  ;;  %v2801_v39 = vpop.f32.mrb[7].mxu0  ;;  %v2614_v36 = vld [vmem:[%s4180_s12 + $0x40] sm:$0xff]  ;;  %v2615_v37 = vld [vmem:[%s4180_s12 + $0x48] sm:$0xff] }
0x1021   : > { %v1677_v40 = vsel %vm928_vm3, %v1674_v35, -inf  ;;  %v2616_v39 = vld [vmem:[%s4180_s12 + $0x50] sm:$0xff] }
0x1022   : > { %1678 = vmax.xlane.f32.xlu0 %v1677_v40  ;;  %v1842_v41 = vsel %vm928_vm3, %v1839_v38, -inf  ;;  %v2617_v40 = vld [vmem:[%s4180_s12 + $0x58] sm:$0xff] }
0x1023   : > { %1843 = vmax.xlane.f32.xlu1 %v1842_v41  ;;  %v2911_v41 = vpack.c.bf16 %v2617_v40, %v2616_v39 }
0x1034   : > { %1853 = vrot.lane.b32.xlu1 %v1595_v27, %s4255_s18  ;;  %s715_s18 = scalar_lea.vmem [#allocation14], %s4259_s3  ;;  %s3284_s3 = scalar_lea.vmem %s3283_s17, 256 }
0x1035   : > { %s2369_s28 = sshll.u32 %s715_s18, 4  ;;  %s2370_s28 = int_to_ptr.vmem [resolvable:$true] %s2369_s28 }
0x1036   : > { %s3278_s8 = scalar_lea.vmem %s2370_s28, 128  ;;  %p3285_p3 = scmp.lt.s32.totalorder %s2370_s28, %s3283_s17 }
0x1037   : > { %p3279_p9 = scmp.ne.s32.totalorder %s2370_s28, %s3278_s8  ;;  %p3286_p2 = scmp.lt.s32.totalorder %s3284_s3, %s3278_s8 }
0x1039   : > { %p3280_p13 = pnand %p3279_p9, %p4261_p4  ;;  %p3287_p0 = por %p3286_p2, %p3285_p3 }
0x103b   : > { %p3281_p1 = pneg %p3280_p13 }
0x103d   : > { %p3288_p10 = pnand %p3287_p0, %p3281_p1 }
0x10af   : > { %v1679_v42 = vpop.xlane.xlu0 %1678 }
0x10b0   : > { %v1680_v43 = vsub.f32 %v1674_v35, %v1679_v42  ;;  %v1844_v44 = vpop.xlane.xlu1 %1843  ;;  %v2619_v42 = vld [vmem:[%s4180_s12 + $0x68] sm:$0xff] }
0x10b1   : > { %v1845_v45 = vsub.f32 %v1839_v38, %v1844_v44  ;;  %v2908_v38 = vpack.c.bf16 %v2615_v37, %v2614_v36  ;;  %v2620_v44 = vld [vmem:[%s4180_s12 + $0x70] sm:$0xff] }
0x10b2   : > { %v1681_v46 = vmul.f32 1.442695, %v1680_v43 }
0x10b3   : > { %v1846_v47 = vmul.f32 1.442695, %v1845_v45  ;;  %v2621_v45 = vld [vmem:[%s4180_s12 + $0x78] sm:$0xff] }
0x10b4   : > { %3064 = vpow2.f32 %v1681_v46  ;;  %v1854_v56 = vpop.permute.xlu1 %1853  ;;  %v2917_v46 = vpack.c.bf16 %v2621_v45, %v2620_v44 }
0x10b5   : > { %3066 = vpow2.f32 %v1846_v47  ;;  %v2612_v47 = vld [vmem:[%s4251_s15 + $0x1] ss:$0 sm:$0xff] }
0x10be   : > { %v3065_v48 = vpop.eup %3064 }
0x10bf   : > { %v1683_v31 = vsel %vm928_vm3, %v3065_v48, 0.0  ;;  %v3067_v49 = vpop.eup %3066 }
0x10c0   : > { %1684 = vadd.xlane.f32.xlu0 %v1683_v31  ;;  %v1848_v50 = vsel %vm928_vm3, %v3067_v49, 0.0 }
0x10c4   : > { %1849 = vadd.xlane.f32.xlu0 %v1848_v50 }
0x10da   : > { %1688 = vrot.lane.b32.xlu0 %v1595_v27, %s4256_s19  ;;  %s4257_s19 = smov 16  }
0x114d   : > { %v1685_v51 = vpop.xlane.xlu0 %1684 }
0x114e   : > { %3068 = vrcp.f32 %v1685_v51 }
0x1151   : > { %v1850_v52 = vpop.xlane.xlu0 %1849 }
0x1152   : > { %3070 = vrcp.f32 %v1850_v52 }
0x1155   : > { %v1689_v53 = vpop.permute.xlu0 %1688 }
0x1156   : > { %2793 = vmatpush3.msra.mxu1 %v1689_v53 }
0x1157   : > { %2802 = vmatprep.subr.mxu1 %v3401_v13 }
0x1158   : > { %v3069_v54 = vpop.eup %3068 }
0x1159   : > { %v1687_v55 = vmul.f32 %v3069_v54, %v3065_v48 }
0x115b   : > { %2795 = vmatmul.mubr.msk.f32.vlgmr.msra.gmra.mrb[14].mxu1 %vm928_vm3, %v1687_v55 }
0x115c   : > { %v3071_v57 = vpop.eup %3070  ;;  %2803 = vmatpush3.msra.mxu1 %v1854_v56  ;;  %2804 = vmatprep.mubr.msk.f32.mxu1 %vm3400_vm1, %v3401_v13 }
0x115d   : > { %v1852_v58 = vmul.f32 %v3071_v57, %v3067_v49  ;;  %2901 = vmatprep.subr.bf16.mxu1 %v3399_v10 }
0x115f   : > { %2805 = vmatmul.mubr.msk.f32.vlgmr.msra.gmra.mrb[16].mxu1 %vm928_vm3, %v1852_v58 }
0x1160   : > { %2826 = vmatprep.mubr.msk.f32.mxu1 %vm3400_vm1, %v3401_v13  ;;  %2903 = vmatpush3.bf16.msra.mxu1 %v2902_v22 }
0x1161   : > { %2904 = vmatprep.subr.bf16.mxu1 %v3399_v10 }
0x122e   : > { %v1760_v1 = vpop.f32.mrb[14].mxu1 }
0x122f   : > { %v2796_v2 = vpop.f32.mrb[15].mxu1 }
0x1232   : > { %v1925_v3 = vpop.f32.mrb[16].mxu1 }
0x1233   : > { %1930 = vrot.lane.b32.xlu1 %v1925_v3, %s4257_s19  ;;  %v2806_v4 = vpop.f32.mrb[17].mxu1  ;;  %s2631_s19 = sshll.u32 %s3531_s2, 7 }
0x1234   : > { %s4096_s25 = scalar_lea.hbm %s4260_s4, %s2631_s19 }
0x12a5   : > { %v1931_v5 = vpop.permute.xlu1 %1930 }
0x12a6   : > { %v1933_v6 = vsel %vm852_vm2, %v1760_v1, %v1931_v5 }
0x12a7   : > { %2816 = vmatmul.mubr.msk.f32.vlgmr.msra.gmra.mrb[8].mxu0 %vm728_vm0, %v1933_v6  ;;  %v2270_v6 = vld [vmem:[%s4258_s23] sm:$0xff] }
0x12a8   : > { %2845 = vmatprep.mubr.msk.f32.mxu0 %vm3400_vm1, %v3401_v13  ;;  %2909 = vmatpush3.bf16.msra.mxu0 %v2908_v38 }
0x12a9   : > { %2910 = vmatprep.subr.bf16.mxu0 %v3399_v10 }
0x12ac   : > { %2912 = vmatpush3.bf16.msra.mxu0 %v2911_v41 }
0x12ad   : > { %2913 = vmatprep.subr.bf16.mxu0 %v3399_v10 }
0x137a   : > { %v2016_v8 = vpop.f32.mrb[8].mxu0 }
0x137b   : > { %v2017_v9 = vadd.f32 %v2603_v7, %v2016_v8  ;;  %v2817_v11 = vpop.f32.mrb[9].mxu0  ;;  %v2271_v7 = vld [vmem:[%s4258_s23 + $0x8] sm:$0xff] }
0x137c   : > { %v2920_v8 = vpack.c.bf16 %v2271_v7, %v2270_v6  ;;  %v2273_v11 = vld [vmem:[%s4258_s23 + $0x18] sm:$0xff] }
0x137d   : > { %v2020_v12 = vadd.f32 %v2017_v9, %v3959_v24  ;;  %v2610_v24 = vld [vmem:[%s4178_s10 + $0x38] sm:$0xff]  ;;  %v2272_v9 = vld [vmem:[%s4258_s23 + $0x10] sm:$0xff] }
0x137e   : > { %v2905_v25 = vpack.c.bf16 %v2610_v24, %v2609_v23 }
0x137f   : > { %v2025_v14 = vsel %vm728_vm0, %v2020_v12, 0.0 }
0x1380   : > { %2026 = vadd.xlane.f32.xlu0 %v2025_v14  ;;  %2906 = vmatpush3.bf16.msra.mxu1 %v2905_v25 }
0x1381   : > { %2919 = vmatprep.subr.bf16.mxu1 %v3399_v10 }
0x140d   : > { %v2027_v15 = vpop.xlane.xlu0 %2026 }
0x140e   : > { %v2028_v16 = vmul.f32 0.03125, %v2027_v15 }
0x1410   : > { %v2029_v17 = vsub.f32 %v2020_v12, %v2028_v16  ;;  %v2923_v12 = vpack.c.bf16 %v2273_v11, %v2272_v9 }
0x1412   : > { %v2030_v18 = vmul.f32 %v2029_v17, %v2029_v17 }
0x1414   : > { %v2031_v19 = vsel %vm728_vm0, %v2030_v18, 0.0 }
0x1415   : > { %2032 = vadd.xlane.f32.xlu1 %v2031_v19  ;;  %v2628_v19 = vld [vmem:[%s4254_s5 + $0x1] ss:$0 sm:$0xff] }
0x14a2   : > { %v2033_v26 = vpop.xlane.xlu1 %2032 }
0x14a3   : > { %v2034_v27 = vmul.f32 0.03125, %v2033_v26 }
0x14a5   : > { %v2035_v28 = vadd.f32 1e-12, %v2034_v27 }
0x14a7   : > { %3072 = vrsqrt.f32 %v2035_v28 }
0x14b1   : > { %v3073_v29 = vpop.eup %3072 }
0x14b2   : > { %v2037_v32 = vmul.f32 %v3073_v29, %v2029_v17 }
0x14b4   : > { %v2044_v34 = vmul.f32 %v2605_v30, %v2037_v32 }
0x14b6   : > { %v2051_v35 = vadd.f32 %v2606_v33, %v2044_v34 }
0x14b8   : > { %2827 = vmatmul.mubr.msk.f32.vlgmr.msra.gmra.mrb[18].mxu1 %vm728_vm0, %v2051_v35 }
0x14b9   : > { %2856 = vmatprep.mubr.msk.f32.mxu1 %vm3400_vm1, %v3401_v13  ;;  %v2618_v13 = vld [vmem:[%s4180_s12 + $0x60] sm:$0xff]  ;;  %2921 = vmatpush3.bf16.msra.mxu1 %v2920_v8 }
0x14ba   : > { %v2914_v43 = vpack.c.bf16 %v2619_v42, %v2618_v13  ;;  %2922 = vmatprep.subr.bf16.mxu1 %v3399_v10 }
0x14bc   : > { %2915 = vmatpush3.bf16.msra.mxu0 %v2914_v43 }
0x14bd   : > { %2916 = vmatprep.subr.bf16.mxu0 %v3399_v10  ;;  %2924 = vmatpush3.bf16.msra.mxu1 %v2923_v12  ;;  %v2627_v10 = vld [vmem:[%s4253_s27 + $0x1] ss:$0 sm:$0xff] }
0x14c0   : > { %2918 = vmatpush3.bf16.msra.mxu0 %v2917_v46 }
0x158b   : > { %v2134_v48 = vpop.f32.mrb[18].mxu1 }
0x158c   : > { %v2135_v31 = vadd.f32 %v2612_v47, %v2134_v48  ;;  %v2828_v49 = vpop.f32.mrb[19].mxu1 }
0x158e   : > { %v2139_v50 = vmul.f32 0.044715, %v2135_v31  ;;  %v2138_v56 = vmul.f32 0.5, %v2135_v31 }
0x1590   : > { %v2140_v51 = vmul.f32 %v2139_v50, %v2135_v31 }
0x1592   : > { %v2141_v52 = vmul.f32 %v2140_v51, %v2135_v31 }
0x1594   : > { %v2142_v53 = vadd.f32 %v2141_v52, %v2135_v31 }
0x1596   : > { %v2143_v54 = vmul.f32 0.7978846, %v2142_v53 }
0x1598   : > { %3074 = vtanh.f32 %v2143_v54 }
0x15a2   : > { %v3075_v55 = vpop.eup %3074 }
0x15a3   : > { %v2145_v57 = vadd.f32 1.0, %v3075_v55 }
0x15a5   : > { %v2146_v58 = vmul.f32 %v2145_v57, %v2138_v56 }
0x15a7   : > { %2846 = vmatmul.mubr.msk.f32.vlgmr.msra.gmra.mrb[10].mxu0 %vm1408_vm4, %v2146_v58 }
0x167a   : > { %v2233_v60 = vpop.f32.mrb[10].mxu0 }
0x167b   : > { %v2234_v61 = vadd.f32 %v2623_v59, %v2233_v60  ;;  %v2847_v62 = vpop.f32.mrb[11].mxu0 }
0x167d   : > { %v2237_v63 = vadd.f32 %v2234_v61, %v2051_v35 }
0x167f   : > { %v2242_v0 = vsel %vm728_vm0, %v2237_v63, 0.0 }
0x1680   : > { %2243 = vadd.xlane.f32.xlu0 %v2242_v0 }
0x170d   : > { %v2244_v1 = vpop.xlane.xlu0 %2243 }
0x170e   : > { %v2245_v2 = vmul.f32 0.03125, %v2244_v1 }
0x1710   : > { %v2246_v3 = vsub.f32 %v2237_v63, %v2245_v2 }
0x1712   : > { %v2247_v4 = vmul.f32 %v2246_v3, %v2246_v3 }
0x1714   : > { %v2248_v5 = vsel %vm728_vm0, %v2247_v4, 0.0 }
0x1715   : > { %2249 = vadd.xlane.f32.xlu0 %v2248_v5 }
0x17a2   : > { %v2250_v14 = vpop.xlane.xlu0 %2249 }
0x17a3   : > { %v2251_v15 = vmul.f32 0.03125, %v2250_v14 }
0x17a5   : > { %v2252_v16 = vadd.f32 1e-12, %v2251_v15 }
0x17a7   : > { %3076 = vrsqrt.f32 %v2252_v16 }
0x17b1   : > { %v3077_v17 = vpop.eup %3076 }
0x17b2   : > { %v2254_v18 = vmul.f32 %v3077_v17, %v2246_v3 }
0x17b4   : > { %v2261_v20 = vmul.f32 %v2627_v10, %v2254_v18 }
0x17b6   : > { %v2268_v21 = vadd.f32 %v2628_v19, %v2261_v20 }
0x17b8   : > { %2857 = vmatmul.mubr.msk.f32.vlgmr.msra.gmra.mrb[20].mxu1 %vm728_vm0, %v2268_v21  ;;  %2269 = vst.msk [vmem:[%s715_s18] sm:$0xff] %vm728_vm0, %v2268_v21 }
0x17b9   : > { %3291 = shalt.err (!%p3288_p10)
}
0x17ba   : > { %s3292_s1 = scalar_lea.hbm %s4096_s25, 128  ;;  %s3296_s16 = scalar_lea.hbm %s4260_s4, 256 }
0x17bb   : > { %p3293_p11 = scmp.ne.s32.totalorder %s4096_s25, %s3292_s1  ;;  %p3297_p5 = scmp.lt.u32.totalorder %s4096_s25, %s4260_s4 }
0x17bc   : > { %p3298_p7 = scmp.lt.u32.totalorder %s3296_s16, %s3292_s1  ;;  %p3300_p9 = scmp.lt.u32.totalorder %s3292_s1, %s4096_s25 }
0x17bd   : > { %p3294_p12 = pnand %p3293_p11, %p4261_p4 }
0x17be   : > { %p3299_p6 = por %p3298_p7, %p3297_p5 }
0x17bf   : > { %p3295_p8 = pneg %p3294_p12 }
0x17c0   : > { %p3301_p13 = por %p3300_p9, %p3299_p6 }
0x17c2   : > { %p3302_p1 = pnand %p3301_p13, %p3295_p8 }
0x17c4   : > { %3305 = shalt.err (!%p3302_p1)
}
0x17c5   : > { %2951 = dma.vmem_to_hbm [thread:$0]  (%p4261_p4), %s2370_s28, 128, %s4096_s25, %s2352_s6   ;;  %vm2349_vm5 = vcmask 253952  }
0x17c6   : > { %s4262_s18 = sld [smem:[#allocation37_spill]]  ;;  %s2632_s1 = sshll.u32 %s3531_s2, 4 }
0x17c7   : > { %s721_s19 = scalar_lea.vmem [#allocation15], %s3775_s7  ;;  %s4263_s4 = sld [smem:[#allocation39_spill]] }
0x17c8   : > { %s2382_s16 = sshll.u32 %s721_s19, 4  ;;  %s2357_s6 = scalar_lea.sflag [#allocation16], %s3775_s7  ;;  %s4126_s16 = int_to_ptr.vmem [resolvable:$true] %s2382_s16 }
0x17c9   : > { %s3306_s25 = scalar_lea.vmem %s4126_s16, 16  ;;  %s3409_s2 = smov [#allocation15]  }
0x17ca   : > { %p3307_p3 = scmp.ne.s32.totalorder %s4126_s16, %s3306_s25  ;;  %s3310_s28 = sshll.u32 %s3409_s2, 4  ;;  %s3311_s28 = int_to_ptr.vmem [resolvable:$false] %s3310_s28 }
0x17cb   : > { %s3312_s8 = scalar_lea.vmem %s3311_s28, 32  ;;  %p3313_p10 = scmp.lt.s32.totalorder %s4126_s16, %s3311_s28 }
0x17cc   : > { %v2274_v22 = vld [vmem:[%s4262_s18] sm:$0x1]  ;;  %p3308_p2 = pnand %p3307_p3, %p4261_p4  ;;  %p3314_p11 = scmp.lt.s32.totalorder %s3312_s8, %s3306_s25 }
0x17cd   : > { %s4124_s5 = scalar_lea.hbm %s4263_s4, %s2632_s1 }
0x17ce   : > { %p3309_p0 = pneg %p3308_p2  ;;  %p3315_p12 = por %p3314_p11, %p3313_p10 }
0x17d0   : > { %p3316_p8 = pnand %p3315_p12, %p3309_p0 }
0x188b   : > { %v2344_v23 = vpop.f32.mrb[20].mxu1 }
0x188c   : > { %v2345_v24 = vadd.f32 %v2344_v23, %v2274_v22  ;;  %v2858_v25 = vpop.f32.mrb[21].mxu1 }
0x188e   : > { %3078 = vtanh.f32 %v2345_v24 }
0x1898   : > { %v3079_v26 = vpop.eup %3078 }
0x1899   : > { %2350 = vst.msk [vmem:[%s721_s19] sm:$0x1] %vm2349_vm5, %v3079_v26 }
0x189a   : > { %3319 = shalt.err (!%p3316_p8)
}
0x189b   : > { %s3320_s7 = scalar_lea.hbm %s4124_s5, 16  ;;  %s3324_s1 = scalar_lea.hbm %s4263_s4, 32 }
0x189c   : > { %p3321_p5 = scmp.ne.s32.totalorder %s4124_s5, %s3320_s7  ;;  %p3325_p9 = scmp.lt.u32.totalorder %s4124_s5, %s4263_s4 }
0x189d   : > { %p3326_p13 = scmp.lt.u32.totalorder %s3324_s1, %s3320_s7  ;;  %p3328_p3 = scmp.lt.u32.totalorder %s3320_s7, %s4124_s5 }
0x189e   : > { %p3322_p7 = pnand %p3321_p5, %p4261_p4 }
0x189f   : > { %p3327_p1 = por %p3326_p13, %p3325_p9 }
0x18a0   : > { %p3323_p6 = pneg %p3322_p7 }
0x18a1   : > { %p3329_p2 = por %p3328_p3, %p3327_p1 }
0x18a3   : > { %p3330_p0 = pnand %p3329_p2, %p3323_p6 }
0x18a5   : > { %3333 = shalt.err (!%p3330_p0)
}
0x18a6   : > { %2952 = dma.vmem_to_hbm [thread:$0]  (%p4261_p4), %s4126_s16, 16, %s4124_s5, %s2357_s6  }
0x18a7 PF: > { %s2394_s17 = sand.u32 1, %s3376_s0   ;;  %p4264_p10 = scmp.ne.s32.totalorder %s4238_s29, 0 }
0x18a8   : > { %p4265_p11 = scmp.ge.s32.totalorder %s3388_s21, 2  ;;  %s2395_s25 = scalar_lea.sflag [#allocation4], %s2394_s17 }
0x18aa   : > { %p2979_p12 = pnand %p4265_p11, %p4264_p10 }
0x18ac   : > { %3367 = dma.done.wait (!%p2979_p12), %s2395_s25, 128  }
0x18ad   : > { %3369 = vsyncadd (!%p2979_p12), %s2395_s25, 4294967168  ;;  %s2404_s2 = scalar_lea.sflag [#allocation16], %s2394_s17 }
0x18ae   : > { %3371 = dma.done.wait (!%p2979_p12), %s2404_s2, 16  }
0x18af   : > { %3373 = vsyncadd (!%p2979_p12), %s2404_s2, 4294967280  ;;  %p39_p4 = scmp.ge.s32.totalorder %s3699_s24, 4   ;;  %s4266_s0 = smov %s3380_s30 }
0x18b0   : > { %s4267_s30 = smov %s3384_s20  ;;  %s4268_s20 = smov %s3710_s11 }
0x18b1   : > { %s4269_s21 = smov %s3699_s24  ;;  %41 = sbr.rel (!%p39_p4) target bundleno = 28 (0x1c), region = 193 }
0x18b8   :  { %2408 = vsyncpa [#allocation3], 1 }
0x18b9   :  { %2410 = vsyncpa [#allocation3 + $0x1], 1 }
0x18ba   :  { %2411 = vsyncpa [#allocation6], 1 }
0x18bb   :  { %2412 = vsyncpa [#allocation9], 1 }
0x18bc   :  { %2413 = vsyncpa [#allocation12], 1 }
0x18bd   :  { %2414 = vsyncpa [#allocation4], 1 }
0x18be   :  { %2416 = vsyncpa [#allocation4 + $0x1], 1 }
0x18bf   :  { %2417 = vsyncpa [#allocation16], 1 }
0x18c0   :  { %2419 = vsyncpa [#allocation16 + $0x1], 1 }

</bundles_post_ra>
